<compile_context>
chip_gen: v7x
topology: tpu7x:2x2x1
jax: 0.10.0
libtpu: 0.0.40
codegen_flags: <defaults>
</compile_context>

<pallas_src>
import functools

import jax
import jax.numpy as jnp
from jax.experimental import pallas as pl
from jax.experimental.pallas import tpu as pltpu


# ----------------------------------------------------------------------------
# Pallas kernels
# ----------------------------------------------------------------------------
def _matmul_bias_act_kernel(x_ref, w_ref, b_ref, o_ref, *, act):
    acc = jnp.dot(x_ref[...], w_ref[...], preferred_element_type=jnp.float32)
    acc = acc + b_ref[...]                 # (1, N) f32 broadcast over rows
    if act == "relu":
        acc = jnp.maximum(acc, 0.0)
    elif act == "sigmoid":
        acc = jax.nn.sigmoid(acc)
    o_ref[...] = acc.astype(o_ref.dtype)


def matmul_bias_act(x, w, b, act="none", *, out_dtype=jnp.float32,
                    tile_m=2048, split_rows=256):
    """y = act(x @ w + b) in one Pallas call (bf16 MXU operands, f32 epilogue)."""
    M, K = x.shape
    K2, N = w.shape
    assert K == K2
    x = x.astype(w.dtype)                  # no-op when activations already bf16
    b2 = b.reshape(1, N).astype(jnp.float32)

    # Row-tile selection:
    #   * big batches stream tile_m-row tiles (pipelined, "parallel"),
    #   * medium layers (>= split_rows rows) split in two so both v7x cores work,
    #   * tiny layers use one full block (no per-grid-step overhead on v5e/v6e).
    if M > tile_m:
        bm = tile_m
    elif M >= split_rows:
        bm = (-(-M // 2) + 7) // 8 * 8     # ceil(M/2) rounded up to sublane=8
    else:
        bm = M
    grid_m = pl.cdiv(M, bm)

    kernel = functools.partial(_matmul_bias_act_kernel, act=act)
    return pl.pallas_call(
        kernel,
        out_shape=jax.ShapeDtypeStruct((M, N), out_dtype),
        grid=(grid_m,),
        in_specs=[
            pl.BlockSpec((bm, K), lambda i: (i, 0)),
            pl.BlockSpec((K, N), lambda i: (0, 0)),
            pl.BlockSpec((1, N), lambda i: (0, 0)),
        ],
        out_specs=pl.BlockSpec((bm, N), lambda i: (i, 0)),
        compiler_params=pltpu.CompilerParams(
            dimension_semantics=("parallel",) if grid_m > 1 else ("arbitrary",),
            vmem_limit_bytes=32 * 1024 * 1024),
    )(x, w, b2)


def _fused_mid_kernel(p_ref, eps_ref, wenc_ref, benc_ref, w1_ref, b1_ref,
                      w2_ref, b2_ref, w3_ref, b3_ref, wd0_ref, bd0_ref,
                      mu_ref, logvar_ref, d0_ref):
    """enc2 + Flatten + fc1/fc2 + reparameterize + fc3 + dec0-as-linear.

    The two non-trivial dots (enc2: 512x32, dec0: 32x800) run with bf16 MXU
    operands and f32 accumulation; the tiny fc1/fc2/fc3 dots, reparameterize
    math and mu/logvar outputs stay f32.
    """
    f32 = jnp.float32
    h = jnp.dot(p_ref[...], wenc_ref[...], preferred_element_type=f32) + benc_ref[...]
    h = jnp.maximum(h, 0.0)                                    # encoder ReLU
    mu = jnp.dot(h, w1_ref[...], preferred_element_type=f32) + b1_ref[...]
    logvar = jnp.dot(h, w2_ref[...], preferred_element_type=f32) + b2_ref[...]
    z = mu + jnp.exp(0.5 * logvar) * eps_ref[...]              # reparameterize
    h3 = jnp.dot(z, w3_ref[...], preferred_element_type=f32) + b3_ref[...]
    d0 = jnp.dot(h3.astype(wd0_ref.dtype), wd0_ref[...],
                 preferred_element_type=f32) + bd0_ref[...]
    d0 = jnp.maximum(d0, 0.0)                                  # dec0 ReLU
    mu_ref[...] = mu
    logvar_ref[...] = logvar
    d0_ref[...] = d0.astype(d0_ref.dtype)                      # bf16 writeback


def fused_mid(patches, eps, prep):
    """Single pallas_call for the encoder tail / bottleneck / decoder head."""
    B = patches.shape[0]
    Z = eps.shape[1]
    D0 = prep["dec0_w"].shape[1]
    args = (patches, eps,
            prep["enc2_w"], prep["enc2_b"],
            prep["fc1_w"], prep["fc1_b"],
            prep["fc2_w"], prep["fc2_b"],
            prep["fc3_w"], prep["fc3_b"],
            prep["dec0_w"], prep["dec0_b"])
    return pl.pallas_call(
        _fused_mid_kernel,
        out_shape=(jax.ShapeDtypeStruct((B, Z), jnp.float32),
                   jax.ShapeDtypeStruct((B, Z), jnp.float32),
                   jax.ShapeDtypeStruct((B, D0), jnp.bfloat16)),
        grid=(1,),
        in_specs=[pl.BlockSpec(a.shape, lambda i: (0, 0)) for a in args],
        out_specs=(pl.BlockSpec((B, Z), lambda i: (0, 0)),
                   pl.BlockSpec((B, Z), lambda i: (0, 0)),
                   pl.BlockSpec((B, D0), lambda i: (0, 0))),
        compiler_params=pltpu.CompilerParams(
            dimension_semantics=("arbitrary",)),
    )(*args)


# ----------------------------------------------------------------------------
# Glue: im2col, conv / phase-decomposed conv-transpose wrappers
# ----------------------------------------------------------------------------
def im2col(x, k, stride):
    """x: (B,H,W,C) -> ((B*Ho*Wo, k*k*C), (B,Ho,Wo)); patch order (kh, kw, C)."""
    B, H, W, C = x.shape
    assert (H - k) % stride == 0 and (W - k) % stride == 0
    Ho = (H - k) // stride + 1
    Wo = (W - k) // stride + 1
    cols = []
    for i in range(k):
        for j in range(k):
            cols.append(x[:, i:i + stride * Ho:stride, j:j + stride * Wo:stride, :])
    patches = jnp.concatenate(cols, axis=-1)
    return patches.reshape(B * Ho * Wo, k * k * C), (B, Ho, Wo)


def conv2d(x_nhwc, w_mat, b, *, k, stride, act, out_dtype):
    """PyTorch Conv2d (padding=0) with a pre-reshaped (k*k*Cin, Cout) weight."""
    cout = w_mat.shape[1]
    patches, (B, Ho, Wo) = im2col(x_nhwc, k, stride)
    y = matmul_bias_act(patches, w_mat, b, act, out_dtype=out_dtype)
    return y.reshape(B, Ho, Wo, cout)


def conv_transpose2d_phase(x_nhwc, w_mat, b_tiled, *, k, stride, act,
                           out_dtype, cout_keep=None):
    """PyTorch ConvTranspose2d (padding=0) via phase (sub-pixel) decomposition.

    Every output pixel belongs to exactly one of stride^2 phases; each phase is
    a stride-1 correlation of the lightly padded original input with a packed
    sub-kernel (extra output columns), so bias+activation remain fused in the
    single Pallas matmul and no zero-inserted intermediate is ever built.
    `cout_keep` drops lane-padding channels *before* the pixel shuffle.
    """
    B, H, W, _ = x_nhwc.shape
    s = stride
    tmax = -(-k // s)                              # ceil(k/s) taps per phase
    cout = w_mat.shape[1] // (s * s)
    pad = tmax - 1
    x_pad = jnp.pad(x_nhwc, ((0, 0), (pad, pad), (pad, pad), (0, 0)))
    patches, (_, Hp, Wp) = im2col(x_pad, tmax, 1)  # Hp = H + tmax - 1
    y = matmul_bias_act(patches, w_mat, b_tiled, act, out_dtype=out_dtype)
    y = y.reshape(B, Hp, Wp, s, s, cout)
    if cout_keep is not None and cout_keep != cout:
        y = y[..., :cout_keep]                     # drop padded channels early
        cout = cout_keep
    y = jnp.transpose(y, (0, 1, 3, 2, 4, 5)).reshape(B, Hp * s, Wp * s, cout)
    Ho = (H - 1) * s + k
    Wo = (W - 1) * s + k
    return y[:, :Ho, :Wo, :]


# ----------------------------------------------------------------------------
# Parameters: raw (PyTorch layouts) + one-time matmul-ready preparation
# ----------------------------------------------------------------------------
def init_params(key, image_channels=3, h_dim=32, z_dim=20):
    keys = iter(jax.random.split(key, 18))

    def norm(shape, scale=0.05):
        return (scale * jax.random.normal(next(keys), shape)).astype(jnp.float32)

    return {
        # encoder Conv2d weights (Cout, Cin, kh, kw)
        "enc0_w": norm((32, image_channels, 4, 4)), "enc0_b": norm((32,)),
        "enc1_w": norm((32, 32, 4, 4)),             "enc1_b": norm((32,)),
        "enc2_w": norm((32, 32, 4, 4)),             "enc2_b": norm((32,)),
        # Linear weights (out, in)
        "fc1_w": norm((z_dim, h_dim)), "fc1_b": norm((z_dim,)),
        "fc2_w": norm((z_dim, h_dim)), "fc2_b": norm((z_dim,)),
        "fc3_w": norm((h_dim, z_dim)), "fc3_b": norm((h_dim,)),
        # decoder ConvTranspose2d weights (Cin, Cout, kh, kw)
        "dec0_w": norm((32, 32, 5, 5)),             "dec0_b": norm((32,)),
        "dec1_w": norm((32, 32, 5, 5)),             "dec1_b": norm((32,)),
        "dec2_w": norm((32, image_channels, 4, 4)), "dec2_b": norm((image_channels,)),
    }


def _conv_weight_matrix(w_oihw):
    cout = w_oihw.shape[0]
    return jnp.transpose(w_oihw, (2, 3, 1, 0)).reshape(-1, cout)   # (k*k*Cin, Cout)


def _phase_deconv_weight(w_iohw, stride):
    """ConvTranspose weight (Cin,Cout,k,k) -> (tmax*tmax*Cin, s*s*Cout) phase matrix."""
    cin, cout, k, _ = w_iohw.shape
    s = stride
    tmax = -(-k // s)
    K = jnp.zeros((tmax, tmax, cin, s * s, cout), jnp.float32)
    for py in range(s):
        for px in range(s):
            ty = -(-(k - py) // s)
            tx = -(-(k - px) // s)
            for t in range(ty):
                for r in range(tx):
                    K = K.at[tmax - 1 - t, tmax - 1 - r, :, py * s + px, :].set(
                        w_iohw[:, :, py + s * t, px + s * r])
    return K.reshape(tmax * tmax * cin, s * s * cout)


def prepare_params(raw, pad_cout=32):
    """One-time (outside-jit) conversion to matmul-ready layouts.

    All MXU matmul weights are pre-cast to bf16 (including enc2 / dec0 inside
    the fused bottleneck kernel); biases and the tiny fc weights stay f32.
    dec2's output channels are zero-padded to `pad_cout` so its phase matmul
    output is lane-dense ((., 4*32) = (., 128) unmasked stores).
    """
    bf16 = jnp.bfloat16
    p = {}
    # encoder convs 0/1: im2col matmul weights
    p["enc0_w"] = _conv_weight_matrix(raw["enc0_w"]).astype(bf16)
    p["enc0_b"] = raw["enc0_b"].reshape(1, -1)
    p["enc1_w"] = _conv_weight_matrix(raw["enc1_w"]).astype(bf16)
    p["enc1_b"] = raw["enc1_b"].reshape(1, -1)
    # enc2 + bottleneck + dec0 live inside the fused kernel
    p["enc2_w"] = _conv_weight_matrix(raw["enc2_w"]).astype(bf16)    # (512, 32)
    p["enc2_b"] = raw["enc2_b"].reshape(1, -1)
    p["fc1_w"] = raw["fc1_w"].T                                      # (h_dim, z_dim)
    p["fc1_b"] = raw["fc1_b"].reshape(1, -1)
    p["fc2_w"] = raw["fc2_w"].T
    p["fc2_b"] = raw["fc2_b"].reshape(1, -1)
    p["fc3_w"] = raw["fc3_w"].T                                      # (z_dim, h_dim)
    p["fc3_b"] = raw["fc3_b"].reshape(1, -1)
    # dec0: ConvTranspose on a 1x1 input == Linear; columns ordered (kh, kw, Cout)
    k0 = raw["dec0_w"].shape[2]
    p["dec0_w"] = jnp.transpose(raw["dec0_w"], (0, 2, 3, 1)).reshape(
        raw["dec0_w"].shape[0], -1).astype(bf16)                     # (32, 5*5*32)
    p["dec0_b"] = jnp.tile(raw["dec0_b"], k0 * k0).reshape(1, -1)
    # dec1/dec2: phase-decomposed transposed-conv matmul weights
    p["dec1_w"] = _phase_deconv_weight(raw["dec1_w"], 2).astype(bf16)  # (288, 128)
    p["dec1_b"] = jnp.tile(raw["dec1_b"], 4).reshape(1, -1)
    c_img = raw["dec2_w"].shape[1]
    w2 = jnp.pad(raw["dec2_w"], ((0, 0), (0, pad_cout - c_img), (0, 0), (0, 0)))
    b2 = jnp.pad(raw["dec2_b"], (0, pad_cout - c_img))
    p["dec2_w"] = _phase_deconv_weight(w2, 2).astype(bf16)             # (128, 128)
    p["dec2_b"] = jnp.tile(b2, 4).reshape(1, -1)                       # (1, 128)
    return p


# ----------------------------------------------------------------------------
# Forward pass (matches VAECNN.forward: returns (recon, mu, logvar))
# ----------------------------------------------------------------------------
def vaecnn_forward(prep, x_nchw, eps):
    bf16 = jnp.bfloat16
    c_img = x_nchw.shape[1]
    x = jnp.transpose(x_nchw, (0, 2, 3, 1)).astype(bf16)      # NCHW -> NHWC, bf16

    # encoder convs 0/1 (k=4, s=2, ReLU): one Pallas matmul call each, bf16 out
    x = conv2d(x, prep["enc0_w"], prep["enc0_b"], k=4, stride=2, act="relu",
               out_dtype=bf16)
    x = conv2d(x, prep["enc1_w"], prep["enc1_b"], k=4, stride=2, act="relu",
               out_dtype=bf16)

    # enc2's 4x4 window covers enc1's whole 4x4 output, so its im2col is a free
    # row-major flatten; enc2 + Flatten + fc1/fc2 + reparameterize + fc3 + dec0
    # (ConvTranspose on a 1x1 input == Linear) fuse into ONE pallas_call.
    B = x.shape[0]
    assert x.shape[1] == 4 and x.shape[2] == 4, x.shape
    patches = x.reshape(B, -1)                                # (B, 512), bf16
    mu, logvar, d0 = fused_mid(patches, eps, prep)

    d = d0.reshape(B, 5, 5, 32)                 # UnFlatten + dec0 output (NHWC)
    d = conv_transpose2d_phase(d, prep["dec1_w"], prep["dec1_b"],
                               k=5, stride=2, act="relu", out_dtype=bf16)
    d = conv_transpose2d_phase(d, prep["dec2_w"], prep["dec2_b"],
                               k=4, stride=2, act="sigmoid",
                               out_dtype=jnp.float32, cout_keep=c_img)

    out = jnp.transpose(d, (0, 3, 1, 2))                      # NHWC -> NCHW
    return out, mu, logvar


if __name__ == "__main__":
    key = jax.random.PRNGKey(0)
    pkey, xkey, ekey = jax.random.split(key, 3)

    raw = init_params(pkey)
    prep = prepare_params(raw)      # one-time weight layout prep, outside jit

    # 22x22 input is the spatial size for which the encoder's Flatten yields
    # h_dim=32 (three valid k=4 s=2 convs: 22 -> 10 -> 4 -> 1).
    x = jax.random.normal(xkey, (2, 3, 22, 22), dtype=jnp.float32)
    # TODO(synk): torch.randn noise for reparameterize is generated outside the
    # kernel with jax.random and passed in as eps.
    eps = jax.random.normal(ekey, (2, 20), dtype=jnp.float32)

    fwd = jax.jit(vaecnn_forward)
    recon, mu, logvar = fwd(prep, x, eps)
    jax.block_until_ready((recon, mu, logvar))

    assert recon.shape == (2, 3, 28, 28), recon.shape
    assert recon.dtype == jnp.float32
    assert mu.shape == (2, 20) and logvar.shape == (2, 20)
    assert bool(jnp.all(jnp.isfinite(recon)))
    print("KERNEL_OK")
</pallas_src>

<mosaic_0001>
module attributes {stable_mosaic.version = 11 : i64} {
  func.func @_matmul_bias_act_kernel(%arg0: i32, %arg1: memref<200x48xbf16, #tpu.memory_space<vmem>>, %arg2: memref<48x32xbf16, #tpu.memory_space<vmem>>, %arg3: memref<1x32xf32, #tpu.memory_space<vmem>>, %arg4: memref<200x32xbf16, #tpu.memory_space<vmem>>) attributes {dimension_semantics = [#tpu.dimension_semantics<arbitrary>], iteration_bounds = array<i64: 1>, scalar_prefetch = 0 : i64, scratch_operands = 0 : i64, tpu.core_type = #tpu.core_type<tc>, window_params = [{transform_indices = @transform_0, window_bounds = array<i64: 200, 48>}, {pipeline_mode = #tpu.pipeline_mode<synchronous>, transform_indices = @transform_1, window_bounds = array<i64: 48, 32>}, {pipeline_mode = #tpu.pipeline_mode<synchronous>, transform_indices = @transform_2, window_bounds = array<i64: 1, 32>}, {transform_indices = @transform_3, window_bounds = array<i64: 200, 32>}]} {
    %c0 = arith.constant 0 : index
    %c0_0 = arith.constant 0 : index
    %0 = vector.load %arg1[%c0, %c0_0] : memref<200x48xbf16, #tpu.memory_space<vmem>>, vector<200x48xbf16>
    %c0_1 = arith.constant 0 : index
    %c0_2 = arith.constant 0 : index
    %1 = vector.load %arg2[%c0_1, %c0_2] : memref<48x32xbf16, #tpu.memory_space<vmem>>, vector<48x32xbf16>
    %cst = arith.constant dense<0.000000e+00> : vector<200x32xf32>
    %2 = tpu.matmul %0, %1, %cst {dimension_numbers = #tpu.dot_dimension_numbers<[1], [0], [0], [1], [0, 0, 1, 1], [], []>} : vector<200x48xbf16>, vector<48x32xbf16>, vector<200x32xf32> -> vector<200x32xf32>
    %c0_3 = arith.constant 0 : index
    %c0_4 = arith.constant 0 : index
    %3 = vector.load %arg3[%c0_3, %c0_4] : memref<1x32xf32, #tpu.memory_space<vmem>>, vector<1x32xf32>
    %4 = vector.broadcast %3 : vector<1x32xf32> to vector<200x32xf32>
    %5 = arith.addf %2, %4 : vector<200x32xf32>
    %cst_5 = arith.constant 0.000000e+00 : f32
    %6 = vector.broadcast %cst_5 : f32 to vector<200x32xf32>
    %7 = arith.maximumf %5, %6 : vector<200x32xf32>
    %8 = arith.truncf %7 : vector<200x32xf32> to vector<200x32xbf16>
    %c0_6 = arith.constant 0 : index
    %c0_7 = arith.constant 0 : index
    %9 = vector.load %arg4[%c0_6, %c0_7] : memref<200x32xbf16, #tpu.memory_space<vmem>>, vector<200x32xbf16>
    tpu.vector_store %arg4[%c0_6, %c0_7], %8 {strides = array<i32>} : memref<200x32xbf16, #tpu.memory_space<vmem>>, vector<200x32xbf16>,
    return
  }
  func.func @transform_0(%arg0: i32) -> (i32, i32) {
    %c0_i32 = arith.constant 0 : i32
    %c0_i32_0 = arith.constant 0 : i32
    return %arg0, %c0_i32 : i32, i32
  }
  func.func @transform_1(%arg0: i32) -> (i32, i32) {
    %c0_i32 = arith.constant 0 : i32
    %c0_i32_0 = arith.constant 0 : i32
    %c0_i32_1 = arith.constant 0 : i32
    return %c0_i32, %c0_i32_0 : i32, i32
  }
  func.func @transform_2(%arg0: i32) -> (i32, i32) {
    %c0_i32 = arith.constant 0 : i32
    %c0_i32_0 = arith.constant 0 : i32
    %c0_i32_1 = arith.constant 0 : i32
    return %c0_i32, %c0_i32_0 : i32, i32
  }
  func.func @transform_3(%arg0: i32) -> (i32, i32) {
    %c0_i32 = arith.constant 0 : i32
    %c0_i32_0 = arith.constant 0 : i32
    return %arg0, %c0_i32 : i32, i32
  }
}

module attributes {stable_mosaic.version = 11 : i64} {
  func.func @_matmul_bias_act_kernel(%arg0: i32, %arg1: memref<32x512xbf16, #tpu.memory_space<vmem>>, %arg2: memref<512x32xbf16, #tpu.memory_space<vmem>>, %arg3: memref<1x32xf32, #tpu.memory_space<vmem>>, %arg4: memref<32x32xbf16, #tpu.memory_space<vmem>>) attributes {dimension_semantics = [#tpu.dimension_semantics<arbitrary>], iteration_bounds = array<i64: 1>, scalar_prefetch = 0 : i64, scratch_operands = 0 : i64, tpu.core_type = #tpu.core_type<tc>, window_params = [{transform_indices = @transform_0, window_bounds = array<i64: 32, 512>}, {pipeline_mode = #tpu.pipeline_mode<synchronous>, transform_indices = @transform_1, window_bounds = array<i64: 512, 32>}, {pipeline_mode = #tpu.pipeline_mode<synchronous>, transform_indices = @transform_2, window_bounds = array<i64: 1, 32>}, {transform_indices = @transform_3, window_bounds = array<i64: 32, 32>}]} {
    %c0 = arith.constant 0 : index
    %c0_0 = arith.constant 0 : index
    %0 = vector.load %arg1[%c0, %c0_0] : memref<32x512xbf16, #tpu.memory_space<vmem>>, vector<32x512xbf16>
    %c0_1 = arith.constant 0 : index
    %c0_2 = arith.constant 0 : index
    %1 = vector.load %arg2[%c0_1, %c0_2] : memref<512x32xbf16, #tpu.memory_space<vmem>>, vector<512x32xbf16>
    %cst = arith.constant dense<0.000000e+00> : vector<32x32xf32>
    %2 = tpu.matmul %0, %1, %cst {dimension_numbers = #tpu.dot_dimension_numbers<[1], [0], [0], [1], [0, 0, 1, 1], [], []>} : vector<32x512xbf16>, vector<512x32xbf16>, vector<32x32xf32> -> vector<32x32xf32>
    %c0_3 = arith.constant 0 : index
    %c0_4 = arith.constant 0 : index
    %3 = vector.load %arg3[%c0_3, %c0_4] : memref<1x32xf32, #tpu.memory_space<vmem>>, vector<1x32xf32>
    %4 = vector.broadcast %3 : vector<1x32xf32> to vector<32x32xf32>
    %5 = arith.addf %2, %4 : vector<32x32xf32>
    %cst_5 = arith.constant 0.000000e+00 : f32
    %6 = vector.broadcast %cst_5 : f32 to vector<32x32xf32>
    %7 = arith.maximumf %5, %6 : vector<32x32xf32>
    %8 = arith.truncf %7 : vector<32x32xf32> to vector<32x32xbf16>
    %c0_6 = arith.constant 0 : index
    %c0_7 = arith.constant 0 : index
    %9 = vector.load %arg4[%c0_6, %c0_7] : memref<32x32xbf16, #tpu.memory_space<vmem>>, vector<32x32xbf16>
    tpu.vector_store %arg4[%c0_6, %c0_7], %8 {strides = array<i32>} : memref<32x32xbf16, #tpu.memory_space<vmem>>, vector<32x32xbf16>,
    return
  }
  func.func @transform_0(%arg0: i32) -> (i32, i32) {
    %c0_i32 = arith.constant 0 : i32
    %c0_i32_0 = arith.constant 0 : i32
    return %arg0, %c0_i32 : i32, i32
  }
  func.func @transform_1(%arg0: i32) -> (i32, i32) {
    %c0_i32 = arith.constant 0 : i32
    %c0_i32_0 = arith.constant 0 : i32
    %c0_i32_1 = arith.constant 0 : i32
    return %c0_i32, %c0_i32_0 : i32, i32
  }
  func.func @transform_2(%arg0: i32) -> (i32, i32) {
    %c0_i32 = arith.constant 0 : i32
    %c0_i32_0 = arith.constant 0 : i32
    %c0_i32_1 = arith.constant 0 : i32
    return %c0_i32, %c0_i32_0 : i32, i32
  }
  func.func @transform_3(%arg0: i32) -> (i32, i32) {
    %c0_i32 = arith.constant 0 : i32
    %c0_i32_0 = arith.constant 0 : i32
    return %arg0, %c0_i32 : i32, i32
  }
}

module attributes {stable_mosaic.version = 11 : i64} {
  func.func @_fused_mid_kernel(%arg0: i32, %arg1: memref<2x512xbf16, #tpu.memory_space<vmem>>, %arg2: memref<2x20xf32, #tpu.memory_space<vmem>>, %arg3: memref<512x32xbf16, #tpu.memory_space<vmem>>, %arg4: memref<1x32xf32, #tpu.memory_space<vmem>>, %arg5: memref<32x20xf32, #tpu.memory_space<vmem>>, %arg6: memref<1x20xf32, #tpu.memory_space<vmem>>, %arg7: memref<32x20xf32, #tpu.memory_space<vmem>>, %arg8: memref<1x20xf32, #tpu.memory_space<vmem>>, %arg9: memref<20x32xf32, #tpu.memory_space<vmem>>, %arg10: memref<1x32xf32, #tpu.memory_space<vmem>>, %arg11: memref<32x800xbf16, #tpu.memory_space<vmem>>, %arg12: memref<1x800xf32, #tpu.memory_space<vmem>>, %arg13: memref<2x20xf32, #tpu.memory_space<vmem>>, %arg14: memref<2x20xf32, #tpu.memory_space<vmem>>, %arg15: memref<2x800xbf16, #tpu.memory_space<vmem>>) attributes {dimension_semantics = [#tpu.dimension_semantics<arbitrary>], iteration_bounds = array<i64: 1>, scalar_prefetch = 0 : i64, scratch_operands = 0 : i64, tpu.core_type = #tpu.core_type<tc>, window_params = [{pipeline_mode = #tpu.pipeline_mode<synchronous>, transform_indices = @transform_0, window_bounds = array<i64: 2, 512>}, {pipeline_mode = #tpu.pipeline_mode<synchronous>, transform_indices = @transform_1, window_bounds = array<i64: 2, 20>}, {pipeline_mode = #tpu.pipeline_mode<synchronous>, transform_indices = @transform_2, window_bounds = array<i64: 512, 32>}, {pipeline_mode = #tpu.pipeline_mode<synchronous>, transform_indices = @transform_3, window_bounds = array<i64: 1, 32>}, {pipeline_mode = #tpu.pipeline_mode<synchronous>, transform_indices = @transform_4, window_bounds = array<i64: 32, 20>}, {pipeline_mode = #tpu.pipeline_mode<synchronous>, transform_indices = @transform_5, window_bounds = array<i64: 1, 20>}, {pipeline_mode = #tpu.pipeline_mode<synchronous>, transform_indices = @transform_6, window_bounds = array<i64: 32, 20>}, {pipeline_mode = #tpu.pipeline_mode<synchronous>, transform_indices = @transform_7, window_bounds = array<i64: 1, 20>}, {pipeline_mode = #tpu.pipeline_mode<synchronous>, transform_indices = @transform_8, window_bounds = array<i64: 20, 32>}, {pipeline_mode = #tpu.pipeline_mode<synchronous>, transform_indices = @transform_9, window_bounds = array<i64: 1, 32>}, {pipeline_mode = #tpu.pipeline_mode<synchronous>, transform_indices = @transform_10, window_bounds = array<i64: 32, 800>}, {pipeline_mode = #tpu.pipeline_mode<synchronous>, transform_indices = @transform_11, window_bounds = array<i64: 1, 800>}, {pipeline_mode = #tpu.pipeline_mode<synchronous>, transform_indices = @transform_12, window_bounds = array<i64: 2, 20>}, {pipeline_mode = #tpu.pipeline_mode<synchronous>, transform_indices = @transform_13, window_bounds = array<i64: 2, 20>}, {pipeline_mode = #tpu.pipeline_mode<synchronous>, transform_indices = @transform_14, window_bounds = array<i64: 2, 800>}]} {
    %c0 = arith.constant 0 : index
    %c0_0 = arith.constant 0 : index
    %0 = vector.load %arg1[%c0, %c0_0] : memref<2x512xbf16, #tpu.memory_space<vmem>>, vector<2x512xbf16>
    %c0_1 = arith.constant 0 : index
    %c0_2 = arith.constant 0 : index
    %1 = vector.load %arg3[%c0_1, %c0_2] : memref<512x32xbf16, #tpu.memory_space<vmem>>, vector<512x32xbf16>
    %cst = arith.constant dense<0.000000e+00> : vector<2x32xf32>
    %2 = tpu.matmul %0, %1, %cst {dimension_numbers = #tpu.dot_dimension_numbers<[1], [0], [0], [1], [0, 0, 1, 1], [], []>} : vector<2x512xbf16>, vector<512x32xbf16>, vector<2x32xf32> -> vector<2x32xf32>
    %c0_3 = arith.constant 0 : index
    %c0_4 = arith.constant 0 : index
    %3 = vector.load %arg4[%c0_3, %c0_4] : memref<1x32xf32, #tpu.memory_space<vmem>>, vector<1x32xf32>
    %4 = vector.broadcast %3 : vector<1x32xf32> to vector<2x32xf32>
    %5 = arith.addf %2, %4 : vector<2x32xf32>
    %cst_5 = arith.constant 0.000000e+00 : f32
    %6 = vector.broadcast %cst_5 : f32 to vector<2x32xf32>
    %7 = arith.maximumf %5, %6 : vector<2x32xf32>
    %c0_6 = arith.constant 0 : index
    %c0_7 = arith.constant 0 : index
    %8 = vector.load %arg5[%c0_6, %c0_7] : memref<32x20xf32, #tpu.memory_space<vmem>>, vector<32x20xf32>
    %cst_8 = arith.constant dense<0.000000e+00> : vector<2x20xf32>
    %9 = tpu.matmul %7, %8, %cst_8 {dimension_numbers = #tpu.dot_dimension_numbers<[1], [0], [0], [1], [0, 0, 1, 1], [], []>} : vector<2x32xf32>, vector<32x20xf32>, vector<2x20xf32> -> vector<2x20xf32>
    %c0_9 = arith.constant 0 : index
    %c0_10 = arith.constant 0 : index
    %10 = vector.load %arg6[%c0_9, %c0_10] : memref<1x20xf32, #tpu.memory_space<vmem>>, vector<1x20xf32>
    %11 = vector.broadcast %10 : vector<1x20xf32> to vector<2x20xf32>
    %12 = arith.addf %9, %11 : vector<2x20xf32>
    %c0_11 = arith.constant 0 : index
    %c0_12 = arith.constant 0 : index
    %13 = vector.load %arg7[%c0_11, %c0_12] : memref<32x20xf32, #tpu.memory_space<vmem>>, vector<32x20xf32>
    %cst_13 = arith.constant dense<0.000000e+00> : vector<2x20xf32>
    %14 = tpu.matmul %7, %13, %cst_13 {dimension_numbers = #tpu.dot_dimension_numbers<[1], [0], [0], [1], [0, 0, 1, 1], [], []>} : vector<2x32xf32>, vector<32x20xf32>, vector<2x20xf32> -> vector<2x20xf32>
    %c0_14 = arith.constant 0 : index
    %c0_15 = arith.constant 0 : index
    %15 = vector.load %arg8[%c0_14, %c0_15] : memref<1x20xf32, #tpu.memory_space<vmem>>, vector<1x20xf32>
    %16 = vector.broadcast %15 : vector<1x20xf32> to vector<2x20xf32>
    %17 = arith.addf %14, %16 : vector<2x20xf32>
    %cst_16 = arith.constant 5.000000e-01 : f32
    %18 = vector.broadcast %cst_16 : f32 to vector<2x20xf32>
    %19 = arith.mulf %18, %17 : vector<2x20xf32>
    %20 = math.exp %19 : vector<2x20xf32>
    %c0_17 = arith.constant 0 : index
    %c0_18 = arith.constant 0 : index
    %21 = vector.load %arg2[%c0_17, %c0_18] : memref<2x20xf32, #tpu.memory_space<vmem>>, vector<2x20xf32>
    %22 = arith.mulf %20, %21 : vector<2x20xf32>
    %23 = arith.addf %12, %22 : vector<2x20xf32>
    %c0_19 = arith.constant 0 : index
    %c0_20 = arith.constant 0 : index
    %24 = vector.load %arg9[%c0_19, %c0_20] : memref<20x32xf32, #tpu.memory_space<vmem>>, vector<20x32xf32>
    %cst_21 = arith.constant dense<0.000000e+00> : vector<2x32xf32>
    %25 = tpu.matmul %23, %24, %cst_21 {dimension_numbers = #tpu.dot_dimension_numbers<[1], [0], [0], [1], [0, 0, 1, 1], [], []>} : vector<2x20xf32>, vector<20x32xf32>, vector<2x32xf32> -> vector<2x32xf32>
    %c0_22 = arith.constant 0 : index
    %c0_23 = arith.constant 0 : index
    %26 = vector.load %arg10[%c0_22, %c0_23] : memref<1x32xf32, #tpu.memory_space<vmem>>, vector<1x32xf32>
    %27 = vector.broadcast %26 : vector<1x32xf32> to vector<2x32xf32>
    %28 = arith.addf %25, %27 : vector<2x32xf32>
    %29 = arith.truncf %28 : vector<2x32xf32> to vector<2x32xbf16>
    %c0_24 = arith.constant 0 : index
    %c0_25 = arith.constant 0 : index
    %30 = vector.load %arg11[%c0_24, %c0_25] : memref<32x800xbf16, #tpu.memory_space<vmem>>, vector<32x800xbf16>
    %cst_26 = arith.constant dense<0.000000e+00> : vector<2x800xf32>
    %31 = tpu.matmul %29, %30, %cst_26 {dimension_numbers = #tpu.dot_dimension_numbers<[1], [0], [0], [1], [0, 0, 1, 1], [], []>} : vector<2x32xbf16>, vector<32x800xbf16>, vector<2x800xf32> -> vector<2x800xf32>
    %c0_27 = arith.constant 0 : index
    %c0_28 = arith.constant 0 : index
    %32 = vector.load %arg12[%c0_27, %c0_28] : memref<1x800xf32, #tpu.memory_space<vmem>>, vector<1x800xf32>
    %33 = vector.broadcast %32 : vector<1x800xf32> to vector<2x800xf32>
    %34 = arith.addf %31, %33 : vector<2x800xf32>
    %cst_29 = arith.constant 0.000000e+00 : f32
    %35 = vector.broadcast %cst_29 : f32 to vector<2x800xf32>
    %36 = arith.maximumf %34, %35 : vector<2x800xf32>
    %c0_30 = arith.constant 0 : index
    %c0_31 = arith.constant 0 : index
    %37 = vector.load %arg13[%c0_30, %c0_31] : memref<2x20xf32, #tpu.memory_space<vmem>>, vector<2x20xf32>
    tpu.vector_store %arg13[%c0_30, %c0_31], %12 {strides = array<i32>} : memref<2x20xf32, #tpu.memory_space<vmem>>, vector<2x20xf32>,
    %c0_32 = arith.constant 0 : index
    %c0_33 = arith.constant 0 : index
    %38 = vector.load %arg14[%c0_32, %c0_33] : memref<2x20xf32, #tpu.memory_space<vmem>>, vector<2x20xf32>
    tpu.vector_store %arg14[%c0_32, %c0_33], %17 {strides = array<i32>} : memref<2x20xf32, #tpu.memory_space<vmem>>, vector<2x20xf32>,
    %39 = arith.truncf %36 : vector<2x800xf32> to vector<2x800xbf16>
    %c0_34 = arith.constant 0 : index
    %c0_35 = arith.constant 0 : index
    %40 = vector.load %arg15[%c0_34, %c0_35] : memref<2x800xbf16, #tpu.memory_space<vmem>>, vector<2x800xbf16>
    tpu.vector_store %arg15[%c0_34, %c0_35], %39 {strides = array<i32>} : memref<2x800xbf16, #tpu.memory_space<vmem>>, vector<2x800xbf16>,
    return
  }
  func.func @transform_0(%arg0: i32) -> (i32, i32) {
    %c0_i32 = arith.constant 0 : i32
    %c0_i32_0 = arith.constant 0 : i32
    %c0_i32_1 = arith.constant 0 : i32
    return %c0_i32, %c0_i32_0 : i32, i32
  }
  func.func @transform_1(%arg0: i32) -> (i32, i32) {
    %c0_i32 = arith.constant 0 : i32
    %c0_i32_0 = arith.constant 0 : i32
    %c0_i32_1 = arith.constant 0 : i32
    return %c0_i32, %c0_i32_0 : i32, i32
  }
  func.func @transform_2(%arg0: i32) -> (i32, i32) {
    %c0_i32 = arith.constant 0 : i32
    %c0_i32_0 = arith.constant 0 : i32
    %c0_i32_1 = arith.constant 0 : i32
    return %c0_i32, %c0_i32_0 : i32, i32
  }
  func.func @transform_3(%arg0: i32) -> (i32, i32) {
    %c0_i32 = arith.constant 0 : i32
    %c0_i32_0 = arith.constant 0 : i32
    %c0_i32_1 = arith.constant 0 : i32
    return %c0_i32, %c0_i32_0 : i32, i32
  }
  func.func @transform_4(%arg0: i32) -> (i32, i32) {
    %c0_i32 = arith.constant 0 : i32
    %c0_i32_0 = arith.constant 0 : i32
    %c0_i32_1 = arith.constant 0 : i32
    return %c0_i32, %c0_i32_0 : i32, i32
  }
  func.func @transform_5(%arg0: i32) -> (i32, i32) {
    %c0_i32 = arith.constant 0 : i32
    %c0_i32_0 = arith.constant 0 : i32
    %c0_i32_1 = arith.constant 0 : i32
    return %c0_i32, %c0_i32_0 : i32, i32
  }
  func.func @transform_6(%arg0: i32) -> (i32, i32) {
    %c0_i32 = arith.constant 0 : i32
    %c0_i32_0 = arith.constant 0 : i32
    %c0_i32_1 = arith.constant 0 : i32
    return %c0_i32, %c0_i32_0 : i32, i32
  }
  func.func @transform_7(%arg0: i32) -> (i32, i32) {
    %c0_i32 = arith.constant 0 : i32
    %c0_i32_0 = arith.constant 0 : i32
    %c0_i32_1 = arith.constant 0 : i32
    return %c0_i32, %c0_i32_0 : i32, i32
  }
  func.func @transform_8(%arg0: i32) -> (i32, i32) {
    %c0_i32 = arith.constant 0 : i32
    %c0_i32_0 = arith.constant 0 : i32
    %c0_i32_1 = arith.constant 0 : i32
    return %c0_i32, %c0_i32_0 : i32, i32
  }
  func.func @transform_9(%arg0: i32) -> (i32, i32) {
    %c0_i32 = arith.constant 0 : i32
    %c0_i32_0 = arith.constant 0 : i32
    %c0_i32_1 = arith.constant 0 : i32
    return %c0_i32, %c0_i32_0 : i32, i32
  }
  func.func @transform_10(%arg0: i32) -> (i32, i32) {
    %c0_i32 = arith.constant 0 : i32
    %c0_i32_0 = arith.constant 0 : i32
    %c0_i32_1 = arith.constant 0 : i32
    return %c0_i32, %c0_i32_0 : i32, i32
  }
  func.func @transform_11(%arg0: i32) -> (i32, i32) {
    %c0_i32 = arith.constant 0 : i32
    %c0_i32_0 = arith.constant 0 : i32
    %c0_i32_1 = arith.constant 0 : i32
    return %c0_i32, %c0_i32_0 : i32, i32
  }
  func.func @transform_12(%arg0: i32) -> (i32, i32) {
    %c0_i32 = arith.constant 0 : i32
    %c0_i32_0 = arith.constant 0 : i32
    %c0_i32_1 = arith.constant 0 : i32
    return %c0_i32, %c0_i32_0 : i32, i32
  }
  func.func @transform_13(%arg0: i32) -> (i32, i32) {
    %c0_i32 = arith.constant 0 : i32
    %c0_i32_0 = arith.constant 0 : i32
    %c0_i32_1 = arith.constant 0 : i32
    return %c0_i32, %c0_i32_0 : i32, i32
  }
  func.func @transform_14(%arg0: i32) -> (i32, i32) {
    %c0_i32 = arith.constant 0 : i32
    %c0_i32_0 = arith.constant 0 : i32
    %c0_i32_1 = arith.constant 0 : i32
    return %c0_i32, %c0_i32_0 : i32, i32
  }
}

module attributes {stable_mosaic.version = 11 : i64} {
  func.func @_matmul_bias_act_kernel(%arg0: i32, %arg1: memref<98x288xbf16, #tpu.memory_space<vmem>>, %arg2: memref<288x128xbf16, #tpu.memory_space<vmem>>, %arg3: memref<1x128xf32, #tpu.memory_space<vmem>>, %arg4: memref<98x128xbf16, #tpu.memory_space<vmem>>) attributes {dimension_semantics = [#tpu.dimension_semantics<arbitrary>], iteration_bounds = array<i64: 1>, scalar_prefetch = 0 : i64, scratch_operands = 0 : i64, tpu.core_type = #tpu.core_type<tc>, window_params = [{transform_indices = @transform_0, window_bounds = array<i64: 98, 288>}, {pipeline_mode = #tpu.pipeline_mode<synchronous>, transform_indices = @transform_1, window_bounds = array<i64: 288, 128>}, {pipeline_mode = #tpu.pipeline_mode<synchronous>, transform_indices = @transform_2, window_bounds = array<i64: 1, 128>}, {transform_indices = @transform_3, window_bounds = array<i64: 98, 128>}]} {
    %c0 = arith.constant 0 : index
    %c0_0 = arith.constant 0 : index
    %0 = vector.load %arg1[%c0, %c0_0] : memref<98x288xbf16, #tpu.memory_space<vmem>>, vector<98x288xbf16>
    %c0_1 = arith.constant 0 : index
    %c0_2 = arith.constant 0 : index
    %1 = vector.load %arg2[%c0_1, %c0_2] : memref<288x128xbf16, #tpu.memory_space<vmem>>, vector<288x128xbf16>
    %cst = arith.constant dense<0.000000e+00> : vector<98x128xf32>
    %2 = tpu.matmul %0, %1, %cst {dimension_numbers = #tpu.dot_dimension_numbers<[1], [0], [0], [1], [0, 0, 1, 1], [], []>} : vector<98x288xbf16>, vector<288x128xbf16>, vector<98x128xf32> -> vector<98x128xf32>
    %c0_3 = arith.constant 0 : index
    %c0_4 = arith.constant 0 : index
    %3 = vector.load %arg3[%c0_3, %c0_4] : memref<1x128xf32, #tpu.memory_space<vmem>>, vector<1x128xf32>
    %4 = vector.broadcast %3 : vector<1x128xf32> to vector<98x128xf32>
    %5 = arith.addf %2, %4 : vector<98x128xf32>
    %cst_5 = arith.constant 0.000000e+00 : f32
    %6 = vector.broadcast %cst_5 : f32 to vector<98x128xf32>
    %7 = arith.maximumf %5, %6 : vector<98x128xf32>
    %8 = arith.truncf %7 : vector<98x128xf32> to vector<98x128xbf16>
    %c0_6 = arith.constant 0 : index
    %c0_7 = arith.constant 0 : index
    %9 = vector.load %arg4[%c0_6, %c0_7] : memref<98x128xbf16, #tpu.memory_space<vmem>>, vector<98x128xbf16>
    tpu.vector_store %arg4[%c0_6, %c0_7], %8 {strides = array<i32>} : memref<98x128xbf16, #tpu.memory_space<vmem>>, vector<98x128xbf16>,
    return
  }
  func.func @transform_0(%arg0: i32) -> (i32, i32) {
    %c0_i32 = arith.constant 0 : i32
    %c0_i32_0 = arith.constant 0 : i32
    return %arg0, %c0_i32 : i32, i32
  }
  func.func @transform_1(%arg0: i32) -> (i32, i32) {
    %c0_i32 = arith.constant 0 : i32
    %c0_i32_0 = arith.constant 0 : i32
    %c0_i32_1 = arith.constant 0 : i32
    return %c0_i32, %c0_i32_0 : i32, i32
  }
  func.func @transform_2(%arg0: i32) -> (i32, i32) {
    %c0_i32 = arith.constant 0 : i32
    %c0_i32_0 = arith.constant 0 : i32
    %c0_i32_1 = arith.constant 0 : i32
    return %c0_i32, %c0_i32_0 : i32, i32
  }
  func.func @transform_3(%arg0: i32) -> (i32, i32) {
    %c0_i32 = arith.constant 0 : i32
    %c0_i32_0 = arith.constant 0 : i32
    return %arg0, %c0_i32 : i32, i32
  }
}

module attributes {stable_mosaic.version = 11 : i64} {
  func.func @_matmul_bias_act_kernel(%arg0: i32, %arg1: memref<200x128xbf16, #tpu.memory_space<vmem>>, %arg2: memref<128x128xbf16, #tpu.memory_space<vmem>>, %arg3: memref<1x128xf32, #tpu.memory_space<vmem>>, %arg4: memref<200x128xf32, #tpu.memory_space<vmem>>) attributes {dimension_semantics = [#tpu.dimension_semantics<parallel>], iteration_bounds = array<i64: 2>, scalar_prefetch = 0 : i64, scratch_operands = 0 : i64, tpu.core_type = #tpu.core_type<tc>, window_params = [{transform_indices = @transform_0, window_bounds = array<i64: 200, 128>}, {pipeline_mode = #tpu.pipeline_mode<synchronous>, transform_indices = @transform_1, window_bounds = array<i64: 128, 128>}, {pipeline_mode = #tpu.pipeline_mode<synchronous>, transform_indices = @transform_2, window_bounds = array<i64: 1, 128>}, {transform_indices = @transform_3, window_bounds = array<i64: 200, 128>}]} {
    %c0 = arith.constant 0 : index
    %c0_0 = arith.constant 0 : index
    %0 = vector.load %arg1[%c0, %c0_0] : memref<200x128xbf16, #tpu.memory_space<vmem>>, vector<200x128xbf16>
    %c0_1 = arith.constant 0 : index
    %c0_2 = arith.constant 0 : index
    %1 = vector.load %arg2[%c0_1, %c0_2] : memref<128x128xbf16, #tpu.memory_space<vmem>>, vector<128x128xbf16>
    %cst = arith.constant dense<0.000000e+00> : vector<200x128xf32>
    %2 = tpu.matmul %0, %1, %cst {dimension_numbers = #tpu.dot_dimension_numbers<[1], [0], [0], [1], [0, 0, 1, 1], [], []>} : vector<200x128xbf16>, vector<128x128xbf16>, vector<200x128xf32> -> vector<200x128xf32>
    %c0_3 = arith.constant 0 : index
    %c0_4 = arith.constant 0 : index
    %3 = vector.load %arg3[%c0_3, %c0_4] : memref<1x128xf32, #tpu.memory_space<vmem>>, vector<1x128xf32>
    %4 = vector.broadcast %3 : vector<1x128xf32> to vector<200x128xf32>
    %5 = arith.addf %2, %4 : vector<200x128xf32>
    %6 = arith.negf %5 : vector<200x128xf32>
    %7 = math.exp %6 : vector<200x128xf32>
    %cst_5 = arith.constant 1.000000e+00 : f32
    %8 = vector.broadcast %cst_5 : f32 to vector<200x128xf32>
    %9 = arith.addf %8, %7 : vector<200x128xf32>
    %10 = arith.divf %8, %9 : vector<200x128xf32>
    %c0_6 = arith.constant 0 : index
    %c0_7 = arith.constant 0 : index
    %11 = vector.load %arg4[%c0_6, %c0_7] : memref<200x128xf32, #tpu.memory_space<vmem>>, vector<200x128xf32>
    tpu.vector_store %arg4[%c0_6, %c0_7], %10 {strides = array<i32>} : memref<200x128xf32, #tpu.memory_space<vmem>>, vector<200x128xf32>,
    return
  }
  func.func @transform_0(%arg0: i32) -> (i32, i32) {
    %c0_i32 = arith.constant 0 : i32
    %c0_i32_0 = arith.constant 0 : i32
    return %arg0, %c0_i32 : i32, i32
  }
  func.func @transform_1(%arg0: i32) -> (i32, i32) {
    %c0_i32 = arith.constant 0 : i32
    %c0_i32_0 = arith.constant 0 : i32
    %c0_i32_1 = arith.constant 0 : i32
    return %c0_i32, %c0_i32_0 : i32, i32
  }
  func.func @transform_2(%arg0: i32) -> (i32, i32) {
    %c0_i32 = arith.constant 0 : i32
    %c0_i32_0 = arith.constant 0 : i32
    %c0_i32_1 = arith.constant 0 : i32
    return %c0_i32, %c0_i32_0 : i32, i32
  }
  func.func @transform_3(%arg0: i32) -> (i32, i32) {
    %c0_i32 = arith.constant 0 : i32
    %c0_i32_0 = arith.constant 0 : i32
    return %arg0, %c0_i32 : i32, i32
  }
}

</mosaic_0001>

<bundles_post_ra>
// kernel: vaecnn_forward.5
= control target key start
LH: loop header
LB: loop body
LE: loop exit
PB: predicated region body
PF: predicated region fallthrough
CT: control target
= control target key end

     0   :  { %v644_v0 = vmov 0.0   ;;  %vm645_vm0 = vmmov 0   ;;  %vm134_vm1 = vcmask 392192   ;;  %vm436_vm2 = vcmask 257024   ;;  %s870_s1 = inlined_call_operand.vmem [shape: bf16[48,32], index: 1, kind: input, shape index: {}]   ;;  %s871_s0 = inlined_call_operand.vmem [shape: bf16[200,48], index: 0, kind: input, shape index: {}]   ;;  %s872_s2 = inlined_call_operand.vmem [shape: f32[1,32], index: 2, kind: input, shape index: {}]   ;;  %s873_s3 = inlined_call_operand.vmem [shape: bf16[200,32], index: 3, kind: output, shape index: {}]  }
   0x1   :  { %562 = vmatprep.subr.bf16.mxu0 %v644_v0  ;;  %v628_v1 = vld [vmem:[%s870_s1] sm:$0xff]   ;;  %620 = vmatprep.subr.bf16.mxu1 %v644_v0  ;;  %v629_v2 = vld [vmem:[%s870_s1 + $0x8] sm:$0xff]   ;;  %v630_v3 = vld [vmem:[%s870_s1 + $0x10] sm:$0xff]  }
   0x2   :  { %568 = vmatprep.mubr.msk.bf16.mxu0 %vm645_vm0, %v644_v0  ;;  %596 = vmatprep.mubr.msk.bf16.mxu1 %vm645_vm0, %v644_v0  ;;  %v631_v4 = vld [vmem:[%s871_s0] sm:$0xff]   ;;  %v632_v5 = vld [vmem:[%s871_s0 + $0x38] sm:$0xff]   ;;  %v633_v6 = vld [vmem:[%s871_s0 + $0x8] sm:$0xff]  }
   0x3   :  { %563 = vmatpush3.bf16.msra.mxu0 %v628_v1  ;;  %623 = vmatpush3.bf16.msra.mxu1 %v628_v1  ;;  %v634_v7 = vld [vmem:[%s871_s0 + $0x40] sm:$0xff]   ;;  %v635_v8 = vld [vmem:[%s871_s0 + $0x10] sm:$0xff]   ;;  %v636_v9 = vld [vmem:[%s871_s0 + $0x48] sm:$0xff]  }
   0x4   :  { %564 = vmatprep.subr.bf16.mxu0 %v644_v0  ;;  %621 = vmatprep.subr.bf16.mxu1 %v644_v0  ;;  %v637_v10 = vld [vmem:[%s871_s0 + $0x18] sm:$0xff]   ;;  %v638_v11 = vld [vmem:[%s871_s0 + $0x50] sm:$0xff]   ;;  %v639_v12 = vld [vmem:[%s871_s0 + $0x20] sm:$0xff]  }
   0x5   :  { %v640_v13 = vld [vmem:[%s871_s0 + $0x58] sm:$0xff]   ;;  %v641_v14 = vld [vmem:[%s871_s0 + $0x28] sm:$0xff]   ;;  %v642_v15 = vld [vmem:[%s871_s0 + $0x60] ss:$0 sps:$4 sm:$0xff]  }
   0x6   :  { %v643_v16 = vld [vmem:[%s871_s0 + $0x30] sm:$0xff]   ;;  %v743_v17 = vld [vmem:[%s872_s2] ss:$0 sm:$0xff] }
   0x7   :  { %565 = vmatpush3.bf16.msra.mxu0 %v629_v2  ;;  %624 = vmatpush3.bf16.msra.mxu1 %v629_v2 }
   0x8   :  { %566 = vmatprep.subr.bf16.mxu0 %v644_v0  ;;  %622 = vmatprep.subr.bf16.mxu1 %v644_v0 }
   0xb   :  { %567 = vmatpush3.bf16.msra.mxu0 %v630_v3  ;;  %625 = vmatpush3.bf16.msra.mxu1 %v630_v3 }
   0xe   :  { %569 = vmatmul.mubr.msk.bf16.vlgmr.msra.gmra.mrb[0].mxu0 %vm134_vm1, %v631_v4  ;;  %597 = vmatmul.mubr.msk.bf16.vlgmr.msra.gmra.mrb[0].mxu1 %vm134_vm1, %v632_v5 }
   0xf   :  { %572 = vmatprep.mubr.msk.bf16.mxu0 %vm645_vm0, %v644_v0  ;;  %600 = vmatprep.mubr.msk.bf16.mxu1 %vm645_vm0, %v644_v0 }
  0x16   :  { %573 = vmatmul.mubr.msk.bf16.gmra.mrb[4].mxu0 %vm134_vm1, %v633_v6  ;;  %601 = vmatmul.mubr.msk.bf16.gmra.mrb[4].mxu1 %vm134_vm1, %v634_v7 }
  0x17   :  { %576 = vmatprep.mubr.msk.bf16.mxu0 %vm645_vm0, %v644_v0  ;;  %604 = vmatprep.mubr.msk.bf16.mxu1 %vm645_vm0, %v644_v0 }
  0x1e   :  { %577 = vmatmul.mubr.msk.bf16.gmra.mrb[8].mxu0 %vm134_vm1, %v635_v8  ;;  %605 = vmatmul.mubr.msk.bf16.gmra.mrb[8].mxu1 %vm134_vm1, %v636_v9 }
  0x1f   :  { %580 = vmatprep.mubr.msk.bf16.mxu0 %vm645_vm0, %v644_v0  ;;  %608 = vmatprep.mubr.msk.bf16.mxu1 %vm645_vm0, %v644_v0 }
  0x26   :  { %581 = vmatmul.mubr.msk.bf16.gmra.mrb[12].mxu0 %vm134_vm1, %v637_v10  ;;  %609 = vmatmul.mubr.msk.bf16.gmra.mrb[12].mxu1 %vm134_vm1, %v638_v11 }
  0x27   :  { %584 = vmatprep.mubr.msk.bf16.mxu0 %vm645_vm0, %v644_v0  ;;  %612 = vmatprep.mubr.msk.bf16.mxu1 %vm645_vm0, %v644_v0 }
  0x2e   :  { %585 = vmatmul.mubr.msk.bf16.gmra.mrb[16].mxu0 %vm134_vm1, %v639_v12  ;;  %613 = vmatmul.mubr.msk.bf16.gmra.mrb[16].mxu1 %vm134_vm1, %v640_v13 }
  0x2f   :  { %588 = vmatprep.mubr.msk.bf16.mxu0 %vm645_vm0, %v644_v0  ;;  %616 = vmatprep.mubr.msk.bf16.mxu1 %vm645_vm0, %v644_v0 }
  0x36   :  { %589 = vmatmul.mubr.msk.bf16.gmra.mrb[20].mxu0 %vm134_vm1, %v641_v14  ;;  %617 = vmatmul.mubr.msk.bf16.gmra.mrb[20].mxu1 %vm134_vm1, %v642_v15 }
  0x37   :  { %592 = vmatprep.mubr.msk.bf16.mxu0 %vm645_vm0, %v644_v0 }
  0x3e   :  { %593 = vmatmul.mubr.msk.bf16.gmra.mrb[24].mxu0 %vm134_vm1, %v643_v16 }
  0xe1   :  { %v208_v18 = vpop.f32.mrb[0].mxu0  ;;  %v264_v19 = vpop.f32.mrb[0].mxu1 }
  0xe2   :  { %v209_v20 = vadd.f32 %v743_v17, %v208_v18  ;;  %v570_v21 = vpop.f32.mrb[1].mxu0  ;;  %v265_v22 = vadd.f32 %v743_v17, %v264_v19  ;;  %v598_v23 = vpop.f32.mrb[1].mxu1 }
  0xe3   :  { %v211_v24 = vpop.f32.mrb[2].mxu0  ;;  %v267_v25 = vpop.f32.mrb[2].mxu1 }
  0xe4   :  { %v310_v26 = vmax.f32 %v209_v20, 0.0  ;;  %v212_v27 = vadd.f32 %v743_v17, %v211_v24  ;;  %v571_v28 = vpop.f32.mrb[3].mxu0  ;;  %v324_v29 = vmax.f32 %v265_v22, 0.0  ;;  %v268_v30 = vadd.f32 %v743_v17, %v267_v25  ;;  %v599_v31 = vpop.f32.mrb[3].mxu1 }
  0xe6   :  { %v521_v32 = vpack.c.bf16 %v310_v26, %v310_v26  ;;  %v311_v33 = vmax.f32 %v212_v27, 0.0  ;;  %v535_v34 = vpack.c.bf16 %v324_v29, %v324_v29  ;;  %v325_v35 = vmax.f32 %v268_v30, 0.0 }
  0xe8   :  { %437 = vst.msk [vmem:[%s873_s3] sm:$0xf] %vm436_vm2, %v521_v32  ;;  %v522_v36 = vpack.c.bf16 %v311_v33, %v311_v33  ;;  %451 = vst.msk [vmem:[%s873_s3 + $0x38] sm:$0xf] %vm436_vm2, %v535_v34  ;;  %v536_v37 = vpack.c.bf16 %v325_v35, %v325_v35 }
  0xe9   :  { %v216_v38 = vpop.f32.mrb[4].mxu0  ;;  %v272_v39 = vpop.f32.mrb[4].mxu1 }
  0xea   :  { %438 = vst.msk [vmem:[%s873_s3 + $0x4] sm:$0xf] %vm436_vm2, %v522_v36  ;;  %v217_v40 = vadd.f32 %v743_v17, %v216_v38  ;;  %v574_v41 = vpop.f32.mrb[5].mxu0  ;;  %452 = vst.msk [vmem:[%s873_s3 + $0x3c] sm:$0xf] %vm436_vm2, %v536_v37  ;;  %v273_v42 = vadd.f32 %v743_v17, %v272_v39  ;;  %v602_v43 = vpop.f32.mrb[5].mxu1 }
  0xeb   :  { %v219_v44 = vpop.f32.mrb[6].mxu0  ;;  %v275_v45 = vpop.f32.mrb[6].mxu1 }
  0xec   :  { %v312_v46 = vmax.f32 %v217_v40, 0.0  ;;  %v220_v47 = vadd.f32 %v743_v17, %v219_v44  ;;  %v575_v48 = vpop.f32.mrb[7].mxu0  ;;  %v326_v49 = vmax.f32 %v273_v42, 0.0  ;;  %v276_v50 = vadd.f32 %v743_v17, %v275_v45  ;;  %v603_v51 = vpop.f32.mrb[7].mxu1 }
  0xee   :  { %v523_v52 = vpack.c.bf16 %v312_v46, %v312_v46  ;;  %v313_v53 = vmax.f32 %v220_v47, 0.0  ;;  %v537_v54 = vpack.c.bf16 %v326_v49, %v326_v49  ;;  %v327_v55 = vmax.f32 %v276_v50, 0.0 }
  0xf0   :  { %439 = vst.msk [vmem:[%s873_s3 + $0x8] sm:$0xf] %vm436_vm2, %v523_v52  ;;  %v524_v56 = vpack.c.bf16 %v313_v53, %v313_v53  ;;  %453 = vst.msk [vmem:[%s873_s3 + $0x40] sm:$0xf] %vm436_vm2, %v537_v54  ;;  %v538_v57 = vpack.c.bf16 %v327_v55, %v327_v55 }
  0xf1   :  { %v224_v58 = vpop.f32.mrb[8].mxu0  ;;  %v280_v59 = vpop.f32.mrb[8].mxu1 }
  0xf2   :  { %440 = vst.msk [vmem:[%s873_s3 + $0xc] sm:$0xf] %vm436_vm2, %v524_v56  ;;  %v225_v60 = vadd.f32 %v743_v17, %v224_v58  ;;  %v578_v61 = vpop.f32.mrb[9].mxu0  ;;  %454 = vst.msk [vmem:[%s873_s3 + $0x44] sm:$0xf] %vm436_vm2, %v538_v57  ;;  %v281_v62 = vadd.f32 %v743_v17, %v280_v59  ;;  %v606_v63 = vpop.f32.mrb[9].mxu1 }
  0xf3   :  { %v227_v0 = vpop.f32.mrb[10].mxu0  ;;  %v283_v1 = vpop.f32.mrb[10].mxu1 }
  0xf4   :  { %v314_v2 = vmax.f32 %v225_v60, 0.0  ;;  %v228_v3 = vadd.f32 %v743_v17, %v227_v0  ;;  %v579_v4 = vpop.f32.mrb[11].mxu0  ;;  %v328_v5 = vmax.f32 %v281_v62, 0.0  ;;  %v284_v6 = vadd.f32 %v743_v17, %v283_v1  ;;  %v607_v7 = vpop.f32.mrb[11].mxu1 }
  0xf6   :  { %v525_v8 = vpack.c.bf16 %v314_v2, %v314_v2  ;;  %v315_v9 = vmax.f32 %v228_v3, 0.0  ;;  %v539_v10 = vpack.c.bf16 %v328_v5, %v328_v5  ;;  %v329_v11 = vmax.f32 %v284_v6, 0.0 }
  0xf8   :  { %441 = vst.msk [vmem:[%s873_s3 + $0x10] sm:$0xf] %vm436_vm2, %v525_v8  ;;  %v526_v12 = vpack.c.bf16 %v315_v9, %v315_v9  ;;  %455 = vst.msk [vmem:[%s873_s3 + $0x48] sm:$0xf] %vm436_vm2, %v539_v10  ;;  %v540_v13 = vpack.c.bf16 %v329_v11, %v329_v11 }
  0xf9   :  { %v232_v14 = vpop.f32.mrb[12].mxu0  ;;  %v288_v15 = vpop.f32.mrb[12].mxu1 }
  0xfa   :  { %442 = vst.msk [vmem:[%s873_s3 + $0x14] sm:$0xf] %vm436_vm2, %v526_v12  ;;  %v233_v16 = vadd.f32 %v743_v17, %v232_v14  ;;  %v582_v18 = vpop.f32.mrb[13].mxu0  ;;  %456 = vst.msk [vmem:[%s873_s3 + $0x4c] sm:$0xf] %vm436_vm2, %v540_v13  ;;  %v289_v19 = vadd.f32 %v743_v17, %v288_v15  ;;  %v610_v20 = vpop.f32.mrb[13].mxu1 }
  0xfb   :  { %v235_v21 = vpop.f32.mrb[14].mxu0  ;;  %v291_v22 = vpop.f32.mrb[14].mxu1 }
  0xfc   :  { %v316_v23 = vmax.f32 %v233_v16, 0.0  ;;  %v236_v24 = vadd.f32 %v743_v17, %v235_v21  ;;  %v583_v25 = vpop.f32.mrb[15].mxu0  ;;  %v330_v26 = vmax.f32 %v289_v19, 0.0  ;;  %v292_v27 = vadd.f32 %v743_v17, %v291_v22  ;;  %v611_v28 = vpop.f32.mrb[15].mxu1 }
  0xfe   :  { %v527_v29 = vpack.c.bf16 %v316_v23, %v316_v23  ;;  %v317_v30 = vmax.f32 %v236_v24, 0.0  ;;  %v541_v31 = vpack.c.bf16 %v330_v26, %v330_v26  ;;  %v331_v32 = vmax.f32 %v292_v27, 0.0 }
 0x100   :  { %443 = vst.msk [vmem:[%s873_s3 + $0x18] sm:$0xf] %vm436_vm2, %v527_v29  ;;  %v528_v33 = vpack.c.bf16 %v317_v30, %v317_v30  ;;  %457 = vst.msk [vmem:[%s873_s3 + $0x50] sm:$0xf] %vm436_vm2, %v541_v31  ;;  %v542_v34 = vpack.c.bf16 %v331_v32, %v331_v32 }
 0x101   :  { %v240_v35 = vpop.f32.mrb[16].mxu0  ;;  %v296_v36 = vpop.f32.mrb[16].mxu1 }
 0x102   :  { %444 = vst.msk [vmem:[%s873_s3 + $0x1c] sm:$0xf] %vm436_vm2, %v528_v33  ;;  %v241_v37 = vadd.f32 %v743_v17, %v240_v35  ;;  %v586_v38 = vpop.f32.mrb[17].mxu0  ;;  %458 = vst.msk [vmem:[%s873_s3 + $0x54] sm:$0xf] %vm436_vm2, %v542_v34  ;;  %v297_v39 = vadd.f32 %v743_v17, %v296_v36  ;;  %v614_v40 = vpop.f32.mrb[17].mxu1 }
 0x103   :  { %v243_v41 = vpop.f32.mrb[18].mxu0  ;;  %v299_v42 = vpop.f32.mrb[18].mxu1 }
 0x104   :  { %v318_v43 = vmax.f32 %v241_v37, 0.0  ;;  %v244_v44 = vadd.f32 %v743_v17, %v243_v41  ;;  %v587_v45 = vpop.f32.mrb[19].mxu0  ;;  %v332_v46 = vmax.f32 %v297_v39, 0.0  ;;  %v300_v47 = vadd.f32 %v743_v17, %v299_v42  ;;  %v615_v48 = vpop.f32.mrb[19].mxu1 }
 0x106   :  { %v529_v49 = vpack.c.bf16 %v318_v43, %v318_v43  ;;  %v319_v50 = vmax.f32 %v244_v44, 0.0  ;;  %v543_v51 = vpack.c.bf16 %v332_v46, %v332_v46  ;;  %v333_v52 = vmax.f32 %v300_v47, 0.0 }
 0x108   :  { %445 = vst.msk [vmem:[%s873_s3 + $0x20] sm:$0xf] %vm436_vm2, %v529_v49  ;;  %v530_v53 = vpack.c.bf16 %v319_v50, %v319_v50  ;;  %459 = vst.msk [vmem:[%s873_s3 + $0x58] sm:$0xf] %vm436_vm2, %v543_v51  ;;  %v544_v54 = vpack.c.bf16 %v333_v52, %v333_v52 }
 0x109   :  { %v248_v55 = vpop.f32.mrb[20].mxu0  ;;  %v304_v56 = vpop.f32.mrb[20].mxu1 }
 0x10a   :  { %446 = vst.msk [vmem:[%s873_s3 + $0x24] sm:$0xf] %vm436_vm2, %v530_v53  ;;  %v249_v57 = vadd.f32 %v743_v17, %v248_v55  ;;  %v590_v58 = vpop.f32.mrb[21].mxu0  ;;  %460 = vst.msk [vmem:[%s873_s3 + $0x5c] sm:$0xf] %vm436_vm2, %v544_v54  ;;  %v305_v59 = vadd.f32 %v743_v17, %v304_v56  ;;  %v618_v60 = vpop.f32.mrb[21].mxu1 }
 0x10b   :  { %v251_v61 = vpop.f32.mrb[22].mxu0  ;;  %v307_v62 = vpop.f32.mrb[22].mxu1 }
 0x10c   :  { %v320_v63 = vmax.f32 %v249_v57, 0.0  ;;  %v252_v0 = vadd.f32 %v743_v17, %v251_v61  ;;  %v591_v1 = vpop.f32.mrb[23].mxu0  ;;  %v334_v2 = vmax.f32 %v305_v59, 0.0  ;;  %v619_v3 = vpop.f32.mrb[23].mxu1 }
 0x10e   :  { %v531_v4 = vpack.c.bf16 %v320_v63, %v320_v63  ;;  %v321_v5 = vmax.f32 %v252_v0, 0.0  ;;  %v545_v6 = vpack.c.bf16 %v334_v2, %v334_v2 }
 0x110   :  { %447 = vst.msk [vmem:[%s873_s3 + $0x28] sm:$0xf] %vm436_vm2, %v531_v4  ;;  %v532_v7 = vpack.c.bf16 %v321_v5, %v321_v5  ;;  %461 = vst.msk [vmem:[%s873_s3 + $0x60] sm:$0xf] %vm436_vm2, %v545_v6 }
 0x111   :  { %v256_v8 = vpop.f32.mrb[24].mxu0 }
 0x112   :  { %448 = vst.msk [vmem:[%s873_s3 + $0x2c] sm:$0xf] %vm436_vm2, %v532_v7  ;;  %v257_v9 = vadd.f32 %v743_v17, %v256_v8  ;;  %v594_v10 = vpop.f32.mrb[25].mxu0 }
 0x113   :  { %v259_v11 = vpop.f32.mrb[26].mxu0 }
 0x114   :  { %v322_v12 = vmax.f32 %v257_v9, 0.0  ;;  %v260_v13 = vadd.f32 %v743_v17, %v259_v11  ;;  %v595_v14 = vpop.f32.mrb[27].mxu0 }
 0x116   :  { %v533_v15 = vpack.c.bf16 %v322_v12, %v322_v12  ;;  %v323_v16 = vmax.f32 %v260_v13, 0.0 }
 0x118   :  { %449 = vst.msk [vmem:[%s873_s3 + $0x30] sm:$0xf] %vm436_vm2, %v533_v15  ;;  %v534_v18 = vpack.c.bf16 %v323_v16, %v323_v16 }
 0x11a   :  { %450 = vst.msk [vmem:[%s873_s3 + $0x34] sm:$0xf] %vm436_vm2, %v534_v18 }

// kernel: vaecnn_forward.6
= control target key start
LH: loop header
LB: loop body
LE: loop exit
PB: predicated region body
PF: predicated region fallthrough
CT: control target
= control target key end

     0   :  { %vm444_vm0 = vcmask 257024   ;;  %s761_s1 = inlined_call_operand.vmem [shape: bf16[512,32], index: 1, kind: input, shape index: {}]   ;;  %s762_s0 = inlined_call_operand.vmem [shape: bf16[32,512], index: 0, kind: input, shape index: {}]   ;;  %s763_s2 = inlined_call_operand.vmem [shape: f32[1,32], index: 2, kind: input, shape index: {}]   ;;  %s764_s3 = inlined_call_operand.vmem [shape: bf16[32,32], index: 3, kind: output, shape index: {}]  }
   0x1   :  { %v558_v0 = vld [vmem:[%s761_s1 + $0x40] sm:$0xff]   ;;  %v562_v4 = vld [vmem:[%s761_s1 + $0x48] sm:$0xff]   ;;  %v566_v8 = vld [vmem:[%s761_s1 + $0x50] sm:$0xff]  }
   0x2   :  { %v559_v1 = vld [vmem:[%s761_s1 + $0xc0] sm:$0xff]   ;;  %502 = vmatprep.subr.bf16.mxu0 %v558_v0  ;;  %v563_v5 = vld [vmem:[%s761_s1 + $0xc8] sm:$0xff]   ;;  %v567_v9 = vld [vmem:[%s761_s1 + $0xd0] sm:$0xff]  }
   0x3   :  { %v560_v2 = vld [vmem:[%s761_s1] sm:$0xff]   ;;  %530 = vmatprep.subr.bf16.mxu1 %v559_v1  ;;  %v564_v6 = vld [vmem:[%s761_s1 + $0x8] sm:$0xff]   ;;  %v568_v10 = vld [vmem:[%s761_s1 + $0x10] sm:$0xff]  }
   0x4   :  { %v561_v3 = vld [vmem:[%s761_s1 + $0x80] sm:$0xff]   ;;  %503 = vmatpush3.bf16.msra.mxu0 %v560_v2  ;;  %v565_v7 = vld [vmem:[%s761_s1 + $0x88] sm:$0xff]   ;;  %v569_v11 = vld [vmem:[%s761_s1 + $0x90] sm:$0xff]  }
   0x5   :  { %531 = vmatpush3.bf16.msra.mxu1 %v561_v3  ;;  %504 = vmatprep.subr.bf16.mxu0 %v562_v4  ;;  %v570_v12 = vld [vmem:[%s761_s1 + $0x58] sm:$0xff]   ;;  %v574_v16 = vld [vmem:[%s761_s1 + $0x60] sm:$0xff]   ;;  %v578_v20 = vld [vmem:[%s761_s1 + $0x68] sm:$0xff]  }
   0x6   :  { %532 = vmatprep.subr.bf16.mxu1 %v563_v5  ;;  %v571_v13 = vld [vmem:[%s761_s1 + $0xd8] sm:$0xff]   ;;  %v575_v17 = vld [vmem:[%s761_s1 + $0xe0] sm:$0xff]   ;;  %v579_v21 = vld [vmem:[%s761_s1 + $0xe8] sm:$0xff]  }
   0x7   :  { %v572_v14 = vld [vmem:[%s761_s1 + $0x18] sm:$0xff]   ;;  %v576_v18 = vld [vmem:[%s761_s1 + $0x20] sm:$0xff]   ;;  %v580_v22 = vld [vmem:[%s761_s1 + $0x28] sm:$0xff]  }
   0x8   :  { %505 = vmatpush3.bf16.msra.mxu0 %v564_v6  ;;  %v573_v15 = vld [vmem:[%s761_s1 + $0x98] sm:$0xff]   ;;  %v577_v19 = vld [vmem:[%s761_s1 + $0xa0] sm:$0xff]   ;;  %v581_v23 = vld [vmem:[%s761_s1 + $0xa8] sm:$0xff]  }
   0x9   :  { %533 = vmatpush3.bf16.msra.mxu1 %v565_v7  ;;  %506 = vmatprep.subr.bf16.mxu0 %v566_v8  ;;  %v582_v24 = vld [vmem:[%s761_s1 + $0x70] sm:$0xff]   ;;  %v586_v28 = vld [vmem:[%s761_s1 + $0x78] sm:$0xff]   ;;  %v453_v42 = vld [vmem:[%s763_s2] ss:$0 sm:$0xff] }
   0xa   :  { %534 = vmatprep.subr.bf16.mxu1 %v567_v9  ;;  %v583_v25 = vld [vmem:[%s761_s1 + $0xf0] sm:$0xff]   ;;  %v587_v29 = vld [vmem:[%s761_s1 + $0xf8] sm:$0xff]  }
   0xb   :  { %v584_v26 = vld [vmem:[%s761_s1 + $0x30] sm:$0xff]   ;;  %v588_v30 = vld [vmem:[%s761_s1 + $0x38] sm:$0xff]  }
   0xc   :  { %507 = vmatpush3.bf16.msra.mxu0 %v568_v10  ;;  %v585_v27 = vld [vmem:[%s761_s1 + $0xb0] sm:$0xff]   ;;  %v589_v31 = vld [vmem:[%s761_s1 + $0xb8] sm:$0xff]  }
   0xd   :  { %535 = vmatpush3.bf16.msra.mxu1 %v569_v11  ;;  %508 = vmatprep.subr.bf16.mxu0 %v570_v12  ;;  %v590_v32 = vld [vmem:[%s762_s0] ss:$16 sps:$4 sm:$0xff]   ;;  %v592_v33 = vld [vmem:[%s762_s0 + $0x4] ss:$16 sps:$4 sm:$0xff]   ;;  %v593_v34 = vld [vmem:[%s762_s0 + $0x8] ss:$16 sps:$4 sm:$0xff]  }
   0xe   :  { %536 = vmatprep.subr.bf16.mxu1 %v571_v13  ;;  %v595_v35 = vld [vmem:[%s762_s0 + $0xc] ss:$16 sps:$4 sm:$0xff]   ;;  %358 = vmatprep.mubr.bf16.mxu0 %v592_v33  ;;  %v596_v36 = vld [vmem:[%s762_s0 + $0x24] ss:$16 sps:$4 sm:$0xff]   ;;  %v600_v38 = vld [vmem:[%s762_s0 + $0x20] ss:$16 sps:$4 sm:$0xff]  }
   0xf   :  { %407 = vmatprep.mubr.bf16.mxu1 %v595_v35  ;;  %v598_v37 = vld [vmem:[%s762_s0 + $0x2c] ss:$16 sps:$4 sm:$0xff]   ;;  %v601_v39 = vld [vmem:[%s762_s0 + $0x28] ss:$16 sps:$4 sm:$0xff]  }
  0x10   :  { %509 = vmatpush3.bf16.msra.mxu0 %v572_v14 }
  0x11   :  { %537 = vmatpush3.bf16.msra.mxu1 %v573_v15  ;;  %510 = vmatprep.subr.bf16.mxu0 %v574_v16 }
  0x12   :  { %538 = vmatprep.subr.bf16.mxu1 %v575_v17 }
  0x14   :  { %511 = vmatpush3.bf16.msra.mxu0 %v576_v18 }
  0x15   :  { %539 = vmatpush3.bf16.msra.mxu1 %v577_v19  ;;  %512 = vmatprep.subr.bf16.mxu0 %v578_v20 }
  0x16   :  { %540 = vmatprep.subr.bf16.mxu1 %v579_v21 }
  0x18   :  { %513 = vmatpush3.bf16.msra.mxu0 %v580_v22 }
  0x19   :  { %541 = vmatpush3.bf16.msra.mxu1 %v581_v23  ;;  %514 = vmatprep.subr.bf16.mxu0 %v582_v24 }
  0x1a   :  { %542 = vmatprep.subr.bf16.mxu1 %v583_v25 }
  0x1c   :  { %515 = vmatpush3.bf16.msra.mxu0 %v584_v26 }
  0x1d   :  { %543 = vmatpush3.bf16.msra.mxu1 %v585_v27  ;;  %516 = vmatprep.subr.bf16.mxu0 %v586_v28 }
  0x1e   :  { %544 = vmatprep.subr.bf16.mxu1 %v587_v29 }
  0x20   :  { %517 = vmatpush3.bf16.msra.mxu0 %v588_v30 }
  0x21   :  { %545 = vmatpush3.bf16.msra.mxu1 %v589_v31 }
  0x23   :  { %359 = vmatmul.mubr.bf16.vlgmr.msra.gmra.mrb[0].mxu0 %v590_v32 }
  0x24   :  { %408 = vmatmul.mubr.bf16.vlgmr.msra.gmra.mrb[0].mxu1 %v593_v34  ;;  %366 = vmatprep.mubr.bf16.mxu0 %v596_v36 }
  0x25   :  { %415 = vmatprep.mubr.bf16.mxu1 %v598_v37 }
  0x2b   :  { %367 = vmatmul.mubr.bf16.gmra.mrb[4].mxu0 %v600_v38 }
  0x2c   :  { %416 = vmatmul.mubr.bf16.gmra.mrb[4].mxu1 %v601_v39 }
  0xf6   :  { %v518_v40 = vpop.f32.mrb[0].mxu0 }
  0xf7   :  { %v546_v41 = vpop.f32.mrb[0].mxu1  ;;  %v519_v43 = vpop.f32.mrb[1].mxu0 }
  0xf8   :  { %v520_v44 = vadd.f32 %v519_v43, %v518_v40  ;;  %v547_v45 = vpop.f32.mrb[1].mxu1  ;;  %v521_v46 = vpop.f32.mrb[2].mxu0 }
  0xf9   :  { %v548_v47 = vadd.f32 %v547_v45, %v546_v41  ;;  %v549_v48 = vpop.f32.mrb[2].mxu1  ;;  %v522_v49 = vpop.f32.mrb[3].mxu0 }
  0xfa   :  { %v361_v50 = vadd.f32 %v520_v44, %v453_v42  ;;  %v523_v51 = vadd.f32 %v522_v49, %v521_v46  ;;  %v550_v52 = vpop.f32.mrb[3].mxu1 }
  0xfb   :  { %v551_v53 = vadd.f32 %v550_v52, %v549_v48 }
  0xfc   :  { %v410_v54 = vadd.f32 %v548_v47, %v361_v50  ;;  %v364_v55 = vadd.f32 %v523_v51, %v453_v42 }
  0xfe   :  { %v424_v56 = vmax.f32 %v410_v54, 0.0  ;;  %v413_v57 = vadd.f32 %v551_v53, %v364_v55  ;;  %v524_v58 = vpop.f32.mrb[4].mxu0 }
  0xff   :  { %v552_v59 = vpop.f32.mrb[4].mxu1  ;;  %v525_v60 = vpop.f32.mrb[5].mxu0 }
 0x100   :  { %v498_v61 = vpack.c.bf16 %v424_v56, %v424_v56  ;;  %v425_v62 = vmax.f32 %v413_v57, 0.0  ;;  %v526_v63 = vadd.f32 %v525_v60, %v524_v58  ;;  %v553_v0 = vpop.f32.mrb[5].mxu1  ;;  %v527_v1 = vpop.f32.mrb[6].mxu0 }
 0x101   :  { %v554_v2 = vadd.f32 %v553_v0, %v552_v59  ;;  %v555_v3 = vpop.f32.mrb[6].mxu1  ;;  %v528_v4 = vpop.f32.mrb[7].mxu0 }
 0x102   :  { %445 = vst.msk [vmem:[%s764_s3] sm:$0xf] %vm444_vm0, %v498_v61  ;;  %v499_v5 = vpack.c.bf16 %v425_v62, %v425_v62  ;;  %v369_v6 = vadd.f32 %v526_v63, %v453_v42  ;;  %v529_v7 = vadd.f32 %v528_v4, %v527_v1  ;;  %v556_v8 = vpop.f32.mrb[7].mxu1 }
 0x103   :  { %v557_v9 = vadd.f32 %v556_v8, %v555_v3 }
 0x104   :  { %446 = vst.msk [vmem:[%s764_s3 + $0x4] sm:$0xf] %vm444_vm0, %v499_v5  ;;  %v418_v10 = vadd.f32 %v554_v2, %v369_v6  ;;  %v372_v11 = vadd.f32 %v529_v7, %v453_v42 }
 0x106   :  { %v426_v12 = vmax.f32 %v418_v10, 0.0  ;;  %v421_v13 = vadd.f32 %v557_v9, %v372_v11 }
 0x108   :  { %v500_v14 = vpack.c.bf16 %v426_v12, %v426_v12  ;;  %v427_v15 = vmax.f32 %v421_v13, 0.0 }
 0x10a   :  { %447 = vst.msk [vmem:[%s764_s3 + $0x8] sm:$0xf] %vm444_vm0, %v500_v14  ;;  %v501_v16 = vpack.c.bf16 %v427_v15, %v427_v15 }
 0x10c   :  { %448 = vst.msk [vmem:[%s764_s3 + $0xc] sm:$0xf] %vm444_vm0, %v501_v16 }

// kernel: vaecnn_forward.7
= control target key start
LH: loop header
LB: loop body
LE: loop exit
PB: predicated region body
PF: predicated region fallthrough
CT: control target
= control target key end

     0   :  { %20 = vsyncpa [#allocation3], 0  ;;  %v131_v30 = vlaneseq  ;;  %v1378_v34 = vmov 1966171168   ;;  %s1716_s0 = inlined_call_operand.vmem [shape: bf16[2,512], index: 0, kind: input, shape index: {}]   ;;  %s1717_s1 = inlined_call_operand.vmem [shape: f32[2,20], index: 1, kind: input, shape index: {}]   ;;  %s1718_s2 = inlined_call_operand.vmem [shape: bf16[512,32], index: 2, kind: input, shape index: {}]   ;;  %s1719_s3 = inlined_call_operand.vmem [shape: f32[1,32], index: 3, kind: input, shape index: {}]   ;;  %s1720_s4 = inlined_call_operand.vmem [shape: f32[32,20], index: 4, kind: input, shape index: {}]   ;;  %s1721_s5 = inlined_call_operand.vmem [shape: f32[1,20], index: 5, kind: input, shape index: {}]   ;;  %s1722_s6 = inlined_call_operand.vmem [shape: f32[32,20], index: 6, kind: input, shape index: {}]   ;;  %s1723_s7 = inlined_call_operand.vmem [shape: f32[1,20], index: 7, kind: input, shape index: {}]   ;;  %s1724_s8 = inlined_call_operand.vmem [shape: f32[20,32], index: 8, kind: input, shape index: {}]   ;;  %s1725_s9 = inlined_call_operand.vmem [shape: f32[1,32], index: 9, kind: input, shape index: {}]   ;;  %s1726_s10 = inlined_call_operand.vmem [shape: bf16[32,800], index: 10, kind: input, shape index: {}]   ;;  %s1727_s11 = inlined_call_operand.vmem [shape: f32[1,800], index: 11, kind: input, shape index: {}]   ;;  %s1728_s12 = inlined_call_operand.hbm [shape: f32[2,20], index: 12, kind: output, shape index: {0}]   ;;  %s1729_s13 = inlined_call_operand.hbm [shape: f32[2,20], index: 13, kind: output, shape index: {1}]   ;;  %s1730_s14 = inlined_call_operand.vmem [shape: bf16[2,800], index: 14, kind: output, shape index: {2}]  }
   0x1   :  { %v1276_v0 = vld [vmem:[%s1718_s2 + $0x40] sm:$0xff]   ;;  %v1280_v4 = vld [vmem:[%s1718_s2 + $0x48] sm:$0xff]   ;;  %v1284_v8 = vld [vmem:[%s1718_s2 + $0x50] sm:$0xff]   ;;  %v129_v35 = vunpack.c.l.s4 %v1378_v34 }
   0x2   :  { %v1277_v1 = vld [vmem:[%s1718_s2 + $0xc0] sm:$0xff]   ;;  %1154 = vmatprep.subr.bf16.mxu0 %v1276_v0  ;;  %v1281_v5 = vld [vmem:[%s1718_s2 + $0xc8] sm:$0xff]   ;;  %v1285_v9 = vld [vmem:[%s1718_s2 + $0xd0] sm:$0xff]   ;;  %v1559_v36 = vshrl.u32 %v131_v30, 7 }
   0x3   :  { %v1278_v2 = vld [vmem:[%s1718_s2] sm:$0xff]   ;;  %1176 = vmatprep.subr.bf16.mxu1 %v1277_v1  ;;  %v1282_v6 = vld [vmem:[%s1718_s2 + $0x8] sm:$0xff]   ;;  %v1286_v10 = vld [vmem:[%s1718_s2 + $0x10] sm:$0xff]   ;;  %v130_v38 = vunpack.c.0.s8 %v129_v35 }
   0x4   :  { %v1279_v3 = vld [vmem:[%s1718_s2 + $0x80] sm:$0xff]   ;;  %1155 = vmatpush3.bf16.msra.mxu0 %v1278_v2  ;;  %v1283_v7 = vld [vmem:[%s1718_s2 + $0x88] sm:$0xff]   ;;  %v1287_v11 = vld [vmem:[%s1718_s2 + $0x90] sm:$0xff]  }
   0x5   :  { %1177 = vmatpush3.bf16.msra.mxu1 %v1279_v3  ;;  %1156 = vmatprep.subr.bf16.mxu0 %v1280_v4  ;;  %v1288_v12 = vld [vmem:[%s1718_s2 + $0x58] sm:$0xff]   ;;  %v1292_v16 = vld [vmem:[%s1718_s2 + $0x60] sm:$0xff]   ;;  %v1296_v20 = vld [vmem:[%s1718_s2 + $0x68] sm:$0xff]   ;;  %v1562_v39 = vsub.s32 %v130_v38, %v1559_v36 }
   0x6   :  { %1178 = vmatprep.subr.bf16.mxu1 %v1281_v5  ;;  %v1289_v13 = vld [vmem:[%s1718_s2 + $0xd8] sm:$0xff]   ;;  %v1293_v17 = vld [vmem:[%s1718_s2 + $0xe0] sm:$0xff]   ;;  %v1297_v21 = vld [vmem:[%s1718_s2 + $0xe8] sm:$0xff]  }
   0x7   :  { %v1290_v14 = vld [vmem:[%s1718_s2 + $0x18] sm:$0xff]   ;;  %v1294_v18 = vld [vmem:[%s1718_s2 + $0x20] sm:$0xff]   ;;  %v1298_v22 = vld [vmem:[%s1718_s2 + $0x28] sm:$0xff]  }
   0x8   :  { %1157 = vmatpush3.bf16.msra.mxu0 %v1282_v6  ;;  %v1291_v15 = vld [vmem:[%s1718_s2 + $0x98] sm:$0xff]   ;;  %v1295_v19 = vld [vmem:[%s1718_s2 + $0xa0] sm:$0xff]   ;;  %v1299_v23 = vld [vmem:[%s1718_s2 + $0xa8] sm:$0xff]  }
   0x9   :  { %1179 = vmatpush3.bf16.msra.mxu1 %v1283_v7  ;;  %1158 = vmatprep.subr.bf16.mxu0 %v1284_v8  ;;  %v1300_v24 = vld [vmem:[%s1718_s2 + $0x70] sm:$0xff]   ;;  %v1304_v28 = vld [vmem:[%s1718_s2 + $0x78] sm:$0xff]   ;;  %v1093_v33 = vld.sshfl [vmem:[%s1716_s0] sm:$0x33 pattern:$0x75316420] }
   0xa   :  { %1180 = vmatprep.subr.bf16.mxu1 %v1285_v9  ;;  %v1301_v25 = vld [vmem:[%s1718_s2 + $0xf0] sm:$0xff]   ;;  %v1305_v29 = vld [vmem:[%s1718_s2 + $0xf8] sm:$0xff]   ;;  %v127_v37 = vcombine.high %v1093_v33, %v1093_v33 }
   0xb   :  { %v1302_v26 = vld [vmem:[%s1718_s2 + $0x30] sm:$0xff]   ;;  %v1306_v31 = vld [vmem:[%s1718_s2 + $0x38] sm:$0xff]  }
   0xc   :  { %1159 = vmatpush3.bf16.msra.mxu0 %v1286_v10  ;;  %v1303_v27 = vld [vmem:[%s1718_s2 + $0xb0] sm:$0xff]   ;;  %v1307_v32 = vld [vmem:[%s1718_s2 + $0xb8] sm:$0xff]  }
   0xd   :  { %1181 = vmatpush3.bf16.msra.mxu1 %v1287_v11  ;;  %1160 = vmatprep.subr.bf16.mxu0 %v1288_v12 }
   0xe   :  { %1182 = vmatprep.subr.bf16.mxu1 %v1289_v13 }
  0x10   :  { %1161 = vmatpush3.bf16.msra.mxu0 %v1290_v14 }
  0x11   :  { %1183 = vmatpush3.bf16.msra.mxu1 %v1291_v15  ;;  %1162 = vmatprep.subr.bf16.mxu0 %v1292_v16 }
  0x12   :  { %1184 = vmatprep.subr.bf16.mxu1 %v1293_v17 }
  0x14   :  { %1163 = vmatpush3.bf16.msra.mxu0 %v1294_v18 }
  0x15   :  { %1185 = vmatpush3.bf16.msra.mxu1 %v1295_v19  ;;  %1164 = vmatprep.subr.bf16.mxu0 %v1296_v20 }
  0x16   :  { %1186 = vmatprep.subr.bf16.mxu1 %v1297_v21 }
  0x18   :  { %1165 = vmatpush3.bf16.msra.mxu0 %v1298_v22 }
  0x19   :  { %1187 = vmatpush3.bf16.msra.mxu1 %v1299_v23  ;;  %1166 = vmatprep.subr.bf16.mxu0 %v1300_v24 }
  0x1a   :  { %1188 = vmatprep.subr.bf16.mxu1 %v1301_v25 }
  0x1c   :  { %1167 = vmatpush3.bf16.msra.mxu0 %v1302_v26 }
  0x1d   :  { %1189 = vmatpush3.bf16.msra.mxu1 %v1303_v27  ;;  %1168 = vmatprep.subr.bf16.mxu0 %v1304_v28 }
  0x1e   :  { %1190 = vmatprep.subr.bf16.mxu1 %v1305_v29 }
  0x20   :  { %1169 = vmatpush3.bf16.msra.mxu0 %v1306_v31 }
  0x21   :  { %1191 = vmatpush3.bf16.msra.mxu1 %v1307_v32 }
  0x22   :  { %21 = vsyncpa [#allocation5], 0  ;;  %v141_v40 = vrot.slane %v127_v37, %v1562_v39  ;;  %v134_v41 = vrot.slane %v1093_v33, %v1562_v39  ;;  %v506_v44 = vld [vmem:[%s1722_s6] sm:$0xff]  ;;  %v507_v45 = vld [vmem:[%s1722_s6 + $0x8] sm:$0xff]  ;;  %v1379_v49 = vmov 0.0|0.0   ;;  %vm1380_vm0 = vmmov 0  }
  0x23   :  { %v1261_v46 = vpack.c.bf16 %v507_v45, %v506_v44  ;;  %v421_v47 = vld [vmem:[%s1720_s4] sm:$0xff]  ;;  %v422_v48 = vld [vmem:[%s1720_s4 + $0x8] sm:$0xff]  ;;  %1260 = vmatprep.subr.bf16.mxu1 %v1379_v49  ;;  %1254 = vmatprep.subr.bf16.mxu0 %v1379_v49  ;;  %v508_v51 = vld [vmem:[%s1722_s6 + $0x10] sm:$0xff]  ;;  %v1381_v57 = vmov 0.0   ;;  %vm432_vm1 = vcmask 261120   ;;  %vm607_vm2 = vcmask 1043456  }
  0x24   :  { %372 = vmatprep.mubr.bf16.mxu0 %v141_v40  ;;  %v143_v42 = vcombine.high %v141_v40, %v141_v40  ;;  %v142_v43 = vcombine.high %v134_v41, %v134_v41  ;;  %v1255_v50 = vpack.c.bf16 %v422_v48, %v421_v47  ;;  %v509_v52 = vld [vmem:[%s1722_s6 + $0x18] sm:$0xff]  ;;  %v423_v53 = vld [vmem:[%s1720_s4 + $0x10] sm:$0xff]  ;;  %v1092_v59 = vld [vmem:[%s1719_s3] ss:$0 sm:$0xff]  ;;  %vm980_vm3 = vcmask 156672   ;;  %s1383_s25 = smov [#allocation2]  }
  0x25   :  { %373 = vmatmul.mubr.bf16.vlgmr.msra.gmra.mrb[0].mxu0 %v134_v41  ;;  %v1264_v54 = vpack.c.bf16 %v509_v52, %v508_v51  ;;  %v424_v55 = vld [vmem:[%s1720_s4 + $0x18] sm:$0xff]  ;;  %v593_v8 = vld [vmem:[%s1724_s8] sm:$0xff]  ;;  %v594_v9 = vld [vmem:[%s1724_s8 + $0x8] sm:$0xff]  ;;  %vm603_vm4 = vcmask 162816   ;;  %v1382_v35 = vmov 0   ;;  %s1066_s26 = sshll.u32 %s1383_s25, 4  ;;  %s1067_s26 = int_to_ptr.vmem [resolvable:$true] %s1066_s26 }
  0x26   :  { %412 = vmatprep.mubr.bf16.mxu1 %v143_v42  ;;  %1256 = vmatpush3.bf16.msra.mxu0 %v1255_v50  ;;  %v1258_v56 = vpack.c.bf16 %v424_v55, %v423_v53  ;;  %v1267_v10 = vpack.c.bf16 %v594_v9, %v593_v8  ;;  %v595_v11 = vld [vmem:[%s1724_s8 + $0x10] sm:$0xf]  ;;  %v1308_v12 = vld [vmem:[%s1726_s10] ss:$28 sps:$4 sm:$0xff]   ;;  %v1313_v14 = vld [vmem:[%s1726_s10 + $0xc] ss:$28 sps:$4 sm:$0xff]   ;;  %p1335_p1 = scmp.lt.s32.totalorder %s1067_s26, %s1067_s26 }
  0x27   :  { %413 = vmatmul.mubr.bf16.vlgmr.msra.gmra.mrb[0].mxu1 %v142_v43  ;;  %1257 = vmatprep.subr.bf16.mxu0 %v1379_v49  ;;  %v1310_v13 = vld [vmem:[%s1726_s10 + $0x4] ss:$28 sps:$4 sm:$0xff]   ;;  %v1316_v30 = vld [vmem:[%s1726_s10 + $0x3c] ss:$28 sps:$4 sm:$0xff]   ;;  %v1322_v34 = vld [vmem:[%s1726_s10 + $0x14] ss:$28 sps:$4 sm:$0xff]  }
  0x28   :  { %1262 = vmatpush3.bf16.msra.mxu1 %v1261_v46  ;;  %1223 = vmatprep.mubr.msk.f32.mxu0 %vm1380_vm0, %v1381_v57  ;;  %v1126_v15 = vld [vmem:[%s1721_s5] ss:$0 sm:$0xff]  ;;  %v1311_v28 = vld [vmem:[%s1726_s10 + $0x8] ss:$28 sps:$4 sm:$0xff]   ;;  %v1314_v32 = vld [vmem:[%s1726_s10 + $0x38] ss:$28 sps:$4 sm:$0xff]  }
  0x29   :  { %1263 = vmatprep.subr.bf16.mxu1 %v1379_v49  ;;  %1234 = vmatprep.mubr.msk.f32.mxu1 %vm1380_vm0, %v1381_v57  ;;  %v1128_v16 = vld [vmem:[%s1723_s7] ss:$0 sm:$0xff]  ;;  %v1320_v42 = vld [vmem:[%s1726_s10 + $0x10] ss:$28 sps:$4 sm:$0xff]   ;;  %v1323_v43 = vld [vmem:[%s1726_s10 + $0x18] ss:$28 sps:$4 sm:$0xff]  }
  0x2a   :  { %1259 = vmatpush3.bf16.msra.mxu0 %v1258_v56  ;;  %v590_v25 = vld [vmem:[%s1717_s1] sm:$0x3]  ;;  %v1326_v45 = vld [vmem:[%s1726_s10 + $0x4c] ss:$28 sps:$4 sm:$0xff]   ;;  %s1384_s5 = smov [#allocation4]  }
  0x2b   :  { %1266 = vmatprep.subr.bf16.mxu0 %v1379_v49  ;;  %v1319_v31 = vld [vmem:[%s1726_s10 + $0x44] ss:$28 sps:$4 sm:$0xff]   ;;  %v1327_v47 = vld [vmem:[%s1726_s10 + $0x50] ss:$28 sps:$4 sm:$0xff]   ;;  %s1076_s7 = sshll.u32 %s1384_s5, 4  ;;  %s1077_s7 = int_to_ptr.vmem [resolvable:$true] %s1076_s7 }
  0x2c   :  { %1265 = vmatpush3.bf16.msra.mxu1 %v1264_v54  ;;  %v1317_v33 = vld [vmem:[%s1726_s10 + $0x40] ss:$28 sps:$4 sm:$0xff]   ;;  %v1324_v46 = vld [vmem:[%s1726_s10 + $0x48] ss:$28 sps:$4 sm:$0xff]   ;;  %s1330_s10 = scalar_lea.vmem %s1067_s26, 32 }
  0x2d   :  { %810 = vmatprep.subr.bf16.mxu1 %v1310_v13  ;;  %v1130_v37 = vld [vmem:[%s1725_s9] ss:$0 sm:$0xff]  ;;  %p1331_p0 = scmp.ne.s32.totalorder %s1067_s26, %s1330_s10  ;;  %p1336_p2 = scmp.lt.s32.totalorder %s1330_s10, %s1330_s10 }
  0x2f   :  { %p1337_p3 = por %p1336_p2, %p1335_p1 }
  0x31   :  { %p1338_p4 = pnand %p1337_p3, %p1331_p0 }
  0xf8   :  { %v1170_v58 = vpop.f32.mrb[0].mxu0 }
  0xf9   :  { %v1171_v60 = vpop.f32.mrb[1].mxu0 }
  0xfa   :  { %v1192_v61 = vpop.f32.mrb[0].mxu1  ;;  %v1172_v62 = vadd.f32 %v1171_v60, %v1170_v58  ;;  %v1173_v63 = vpop.f32.mrb[2].mxu0 }
  0xfb   :  { %v1193_v0 = vpop.f32.mrb[1].mxu1  ;;  %v1174_v1 = vpop.f32.mrb[3].mxu0 }
  0xfc   :  { %v375_v2 = vadd.f32 %v1172_v62, %v1092_v59  ;;  %v1194_v3 = vadd.f32 %v1193_v0, %v1192_v61  ;;  %v1195_v4 = vpop.f32.mrb[2].mxu1 }
  0xfd   :  { %v1196_v5 = vpop.f32.mrb[3].mxu1 }
  0xfe   :  { %v415_v6 = vadd.f32 %v1194_v3, %v375_v2 }
 0x100   :  { %v420_v7 = vmax.f32 %v415_v6, 0.0 }
 0x102   :  { %1224 = vmatmul.mubr.msk.f32.vlgmr.msra.gmra.mrb[4].mxu0 %vm432_vm1, %v420_v7  ;;  %1235 = vmatmul.mubr.msk.f32.vlgmr.msra.gmra.mrb[4].mxu1 %vm432_vm1, %v420_v7 }
 0x103   :  { %1243 = vmatprep.mubr.msk.f32.mxu0 %vm1380_vm0, %v1381_v57  ;;  %1268 = vmatpush3.bf16.msra.mxu0 %v1267_v10 }
 0x104   :  { %1241 = vmatprep.subr.mxu0 %v1381_v57  ;;  %811 = vmatpush1.bf16.msra.mxu1 %v1308_v12 }
 0x105   :  { %812 = vmatprep.subr.bf16.mxu1 %v1316_v30  ;;  %842 = vmatprep.mubr.bf16.mxu1 %v1382_v35 }
 0x107   :  { %1242 = vmatpush3.msk.msra.mxu0 %vm607_vm2, %v595_v11 }
 0x108   :  { %851 = vmatprep.subr.bf16.mxu0 %v1313_v14  ;;  %813 = vmatpush1.bf16.msra.mxu1 %v1314_v32 }
 0x109   :  { %892 = vmatprep.subr.bf16.mxu1 %v1322_v34 }
 0x1d5   :  { %v502_v17 = vpop.f32.mrb[4].mxu0  ;;  %v583_v18 = vpop.f32.mrb[4].mxu1 }
 0x1d6   :  { %v503_v19 = vadd.f32 %v1126_v15, %v502_v17  ;;  %v584_v20 = vadd.f32 %v1128_v16, %v583_v18  ;;  %v1225_v21 = vpop.f32.mrb[5].mxu0  ;;  %v1236_v22 = vpop.f32.mrb[5].mxu1 }
 0x1d8   :  { %v587_v23 = vmul.f32 0.5, %v584_v20  ;;  %981 = vst.msk [vmem:[#allocation2] sm:$0x3] %vm980_vm3, %v503_v19  ;;  %982 = vst.msk [vmem:[#allocation4] sm:$0x3] %vm980_vm3, %v584_v20 }
 0x1da   :  { %v588_v24 = vmul.f32 1.442695, %v587_v23 }
 0x1dc   :  { %1328 = vpow2.f32 %v588_v24 }
 0x1e6   :  { %v1329_v26 = vpop.eup %1328 }
 0x1e7   :  { %v591_v27 = vmul.f32 %v1329_v26, %v590_v25 }
 0x1e9   :  { %v592_v29 = vadd.f32 %v591_v27, %v503_v19 }
 0x1eb   :  { %1244 = vmatmul.mubr.msk.f32.vlgmr.msra.gmra.mrb[6].mxu0 %vm603_vm4, %v592_v29 }
 0x1ec   :  { %852 = vmatpush1.bf16.msra.mxu0 %v1311_v28  ;;  %883 = vmatprep.mubr.bf16.mxu0 %v1382_v35 }
 0x1ed   :  { %853 = vmatprep.subr.bf16.mxu0 %v1319_v31 }
 0x1f0   :  { %854 = vmatpush1.bf16.msra.mxu0 %v1317_v33 }
 0x1f1   :  { %1246 = vmatprep.subr.bf16.mxu0 %v1381_v57 }
 0x2be   :  { %v677_v38 = vpop.f32.mrb[6].mxu0 }
 0x2bf   :  { %v678_v40 = vadd.f32 %v1130_v37, %v677_v38  ;;  %v1245_v41 = vpop.f32.mrb[7].mxu0 }
 0x2c1   :  { %v681_v44 = vpack.c.bf16 %v678_v40, %v678_v40 }
 0x2c3   :  { %1147 = vmatmul.mubr.msk.bf16.vlgmr.msra.gmra.mrb[8].mxu1 %vm432_vm1, %v681_v44  ;;  %1148 = vmatmul.mubr.msk.bf16.vlgmr.msra.gmra.mrb[8].mxu0 %vm432_vm1, %v681_v44 }
 0x2c4   :  { %893 = vmatpush1.bf16.msra.mxu1 %v1320_v42  ;;  %1247 = vmatpush3.bf16.msra.mxu0 %v1323_v43 }
 0x2c5   :  { %894 = vmatprep.subr.bf16.mxu1 %v1326_v45  ;;  %1248 = vmatprep.subr.bf16.mxu0 %v1381_v57 }
 0x2c6   :  { %924 = vmatprep.mubr.bf16.mxu1 %v1382_v35  ;;  %1250 = vmatprep.mubr.msk.bf16.mxu0 %vm1380_vm0, %v1381_v57 }
 0x2c8   :  { %895 = vmatpush1.bf16.msra.mxu1 %v1324_v46  ;;  %1249 = vmatpush3.bf16.msra.mxu0 %v1327_v47 }
 0x2cb   :  { %1149 = vmatmul.mubr.msk.bf16.vlgmr.msra.gmra.mrb[12].mxu1 %vm432_vm1, %v681_v44  ;;  %1251 = vmatmul.mubr.msk.bf16.vlgmr.msra.gmra.mrb[12].mxu0 %vm432_vm1, %v681_v44 }
 0x2cc   :  { %1341 = shalt.err (!%p1338_p4)
}
 0x2cd   :  { %s1342_s6 = scalar_lea.hbm %s1728_s12, 32 }
 0x2ce   :  { %p1343_p5 = scmp.ne.s32.totalorder %s1728_s12, %s1342_s6  ;;  %p1346_p6 = scmp.lt.u32.totalorder %s1342_s6, %s1728_s12 }
 0x2d0   :  { %p1348_p7 = pnand %p1346_p6, %p1343_p5 }
 0x2d2   :  { %1351 = shalt.err (!%p1348_p7)
}
 0x2d3   :  { %1069 = dma.vmem_to_hbm [thread:$0]  %s1067_s26, 32, %s1728_s12, [#allocation3]  }
 0x2d4   :  { %s1352_s2 = scalar_lea.vmem %s1077_s7, 32  ;;  %p1357_p9 = scmp.lt.s32.totalorder %s1077_s7, %s1077_s7 }
 0x2d5   :  { %p1353_p8 = scmp.ne.s32.totalorder %s1077_s7, %s1352_s2  ;;  %p1358_p10 = scmp.lt.s32.totalorder %s1352_s2, %s1352_s2 }
 0x2d7   :  { %p1359_p11 = por %p1358_p10, %p1357_p9 }
 0x2d9   :  { %p1360_p12 = pnand %p1359_p11, %p1353_p8 }
 0x2db   :  { %1363 = shalt.err (!%p1360_p12)
}
 0x2dc   :  { %s1364_s17 = scalar_lea.hbm %s1729_s13, 32 }
 0x2dd   :  { %p1365_p13 = scmp.ne.s32.totalorder %s1729_s13, %s1364_s17  ;;  %p1368_p0 = scmp.lt.u32.totalorder %s1364_s17, %s1729_s13 }
 0x2df   :  { %p1370_p1 = pnand %p1368_p0, %p1365_p13 }
 0x2e1   :  { %1373 = shalt.err (!%p1370_p1)
}
 0x2e2   :  { %1079 = dma.vmem_to_hbm [thread:$0]  %s1077_s7, 32, %s1729_s13, [#allocation5]   ;;  %v702_v48 = vsub.s32 0, %v1559_v36  ;;  %v710_v49 = vsub.s32 2, %v1559_v36  ;;  %v698_v50 = vld [vmem:[%s1727_s11] sm:$0x7f] }
 0x2e3   :  { %v706_v51 = vsub.s32 1, %v1559_v36  ;;  %v714_v52 = vsub.s32 3, %v1559_v36  ;;  %v718_v63 = vsub.s32 4, %v1559_v36  ;;  %v726_v0 = vsub.s32 6, %v1559_v36 }
 0x2e4   :  { %v703_v53 = vrot.slane %v698_v50, %v702_v48  ;;  %v711_v54 = vrot.slane %v698_v50, %v710_v49  ;;  %v722_v5 = vsub.s32 5, %v1559_v36  ;;  %vm1046_vm5 = vcmask 1040384  }
 0x2e5   :  { %v707_v55 = vrot.slane %v698_v50, %v706_v51  ;;  %v715_v56 = vrot.slane %v698_v50, %v714_v52  ;;  %vm1047_vm6 = vcmask 1041409   ;;  %v719_v12 = vrot.slane %v698_v50, %v718_v63 }
 0x2e6   :  { %v727_v13 = vrot.slane %v698_v50, %v726_v0  ;;  %v723_v16 = vrot.slane %v698_v50, %v722_v5  ;;  %vm1048_vm7 = vmor %vm1047_vm6, %vm1046_vm5  ;;  %vm1049_vm8 = vcmask 1042434   ;;  %vm1051_vm10 = vcmask 1043459  }
 0x2e7   :  { %vm1050_vm9 = vmor %vm1049_vm8, %vm1048_vm7  ;;  %vm1053_vm12 = vcmask 1044484   ;;  %vm1055_vm14 = vcmask 1045509   ;;  %vm1057_vm0 = vcmask 260102  }
 0x2e8   :  { %vm1052_vm11 = vmor %vm1051_vm10, %vm1050_vm9 }
 0x2e9   :  { %vm1054_vm13 = vmor %vm1053_vm12, %vm1052_vm11 }
 0x2ea   :  { %vm1056_vm15 = vmor %vm1055_vm14, %vm1054_vm13 }
 0x2eb   :  { %vm1058_vm1 = vmor %vm1057_vm0, %vm1056_vm15 }
 0x396   :  { %v844_v57 = vpop.f32.mrb[8].mxu1  ;;  %v885_v58 = vpop.f32.mrb[8].mxu0 }
 0x397   :  { %v845_v59 = vadd.f32 %v844_v57, %v703_v53  ;;  %v886_v60 = vadd.f32 %v885_v58, %v711_v54  ;;  %v846_v61 = vpop.f32.mrb[9].mxu1  ;;  %v887_v62 = vpop.f32.mrb[9].mxu0 }
 0x398   :  { %v847_v1 = vadd.f32 %v846_v61, %v707_v55  ;;  %v888_v2 = vadd.f32 %v887_v62, %v715_v56  ;;  %v848_v3 = vpop.f32.mrb[10].mxu1  ;;  %v889_v4 = vpop.f32.mrb[10].mxu0 }
 0x399   :  { %v973_v6 = vmax.f32 %v845_v59, 0.0  ;;  %v975_v7 = vmax.f32 %v886_v60, 0.0  ;;  %v849_v8 = vpop.f32.mrb[11].mxu1  ;;  %v890_v9 = vpop.f32.mrb[11].mxu0 }
 0x39a   :  { %v974_v10 = vmax.f32 %v847_v1, 0.0  ;;  %v976_v11 = vmax.f32 %v888_v2, 0.0 }
 0x39c   :  { %v1151_v14 = vpack.c.bf16 %v974_v10, %v973_v6  ;;  %v1152_v15 = vpack.c.bf16 %v976_v11, %v975_v7 }
 0x39e   :  { %v1006_v17 = vrot.slane %v1151_v14, %v1562_v39  ;;  %v1013_v18 = vrot.slane %v1152_v15, %v1562_v39  ;;  %v926_v36 = vpop.f32.mrb[12].mxu1  ;;  %v967_v19 = vpop.f32.mrb[12].mxu0 }
 0x39f   :  { %v927_v20 = vadd.f32 %v926_v36, %v719_v12  ;;  %v968_v21 = vadd.f32 %v967_v19, %v727_v13  ;;  %v928_v22 = vpop.f32.mrb[13].mxu1  ;;  %v1252_v23 = vpop.f32.mrb[13].mxu0 }
 0x3a0   :  { %v1028_v24 = vcombine.low %v1006_v17, %v1013_v18  ;;  %v929_v25 = vadd.f32 %v928_v22, %v723_v16  ;;  %v930_v26 = vpop.f32.mrb[14].mxu1  ;;  %v970_v27 = vpop.f32.mrb[14].mxu0 }
 0x3a1   :  { %v977_v28 = vmax.f32 %v927_v20, 0.0  ;;  %v979_v29 = vmax.f32 %v968_v21, 0.0  ;;  %v931_v30 = vpop.f32.mrb[15].mxu1  ;;  %v1253_v31 = vpop.f32.mrb[15].mxu0 }
 0x3a2   :  { %v978_v32 = vmax.f32 %v929_v25, 0.0  ;;  %v1036_v40 = vrot.slane %v1028_v24, %v1562_v39 }
 0x3a3   :  { %v989_v33 = vpack.c.bf16 %v979_v29, %v979_v29 }
 0x3a4   :  { %v1153_v34 = vpack.c.bf16 %v978_v32, %v977_v28 }
 0x3a5   :  { %v1027_v35 = vrot.slane %v989_v33, %v1562_v39 }
 0x3a6   :  { %v1020_v37 = vrot.slane %v1153_v34, %v1562_v39 }
 0x3a8   :  { %v1029_v38 = vcombine.low %v1020_v37, %v1027_v35 }
 0x3aa   :  { %v1043_v41 = vrot.slane %v1029_v38, %v1562_v39 }
 0x3ac   :  { %v1044_v42 = vcombine.low %v1036_v40, %v1043_v41 }
 0x3ae   :  { %1059 = vst.msk [vmem:[%s1730_s14] sm:$0x7f] %vm1058_vm1, %v1044_v42 }
 0x3af   :  { %1374 = dma.done.wait [#allocation3], 32  }
 0x3b0   :  { %1375 = vsyncadd [#allocation3], 4294967264 }
 0x3b1   :  { %1376 = dma.done.wait [#allocation5], 32  }
 0x3b2   :  { %1377 = vsyncadd [#allocation5], 4294967264 }
 0x3b3   :  { %1090 = vsyncpa [#allocation3], 1 }
 0x3b4   :  { %1091 = vsyncpa [#allocation5], 1 }

// kernel: vaecnn_forward.8
= control target key start
LH: loop header
LB: loop body
LE: loop exit
PB: predicated region body
PF: predicated region fallthrough
CT: control target
= control target key end

     0   :  { %v827_v1 = vmov 0.0   ;;  %vm828_vm0 = vmmov 0   ;;  %vm292_vm1 = vcmask 261120   ;;  %s1025_s1 = inlined_call_operand.vmem [shape: bf16[288,128], index: 1, kind: input, shape index: {}]   ;;  %s1026_s0 = inlined_call_operand.vmem [shape: bf16[98,288], index: 0, kind: input, shape index: {}]   ;;  %s1027_s2 = inlined_call_operand.vmem [shape: f32[1,128], index: 2, kind: input, shape index: {}]   ;;  %s1028_s3 = inlined_call_operand.vmem [shape: bf16[98,128], index: 3, kind: output, shape index: {}]  }
   0x1   :  { %v782_v0 = vld [vmem:[%s1025_s1 + $0x40] sm:$0xff]   ;;  %748 = vmatprep.subr.bf16.mxu1 %v827_v1  ;;  %752 = vmatprep.mubr.msk.bf16.mxu1 %vm828_vm0, %v827_v1  ;;  %v784_v3 = vld [vmem:[%s1025_s1 + $0x48] sm:$0xff]   ;;  %v786_v5 = vld [vmem:[%s1025_s1 + $0x50] sm:$0xff]  }
   0x2   :  { %v783_v2 = vld [vmem:[%s1025_s1] sm:$0xff]   ;;  %681 = vmatprep.subr.bf16.mxu0 %v782_v0  ;;  %v785_v4 = vld [vmem:[%s1025_s1 + $0x8] sm:$0xff]   ;;  %v787_v6 = vld [vmem:[%s1025_s1 + $0x10] sm:$0xff]  }
   0x3   :  { %682 = vmatpush3.bf16.msra.mxu0 %v783_v2  ;;  %v788_v7 = vld [vmem:[%s1025_s1 + $0x58] sm:$0xff]   ;;  %v790_v9 = vld [vmem:[%s1025_s1 + $0x60] sm:$0xff]   ;;  %v792_v12 = vld [vmem:[%s1025_s1 + $0x68] sm:$0xff]  }
   0x4   :  { %683 = vmatprep.subr.bf16.mxu0 %v784_v3  ;;  %v789_v8 = vld [vmem:[%s1025_s1 + $0x18] sm:$0xff]   ;;  %v796_v10 = vld [vmem:[%s1025_s1 + $0x80] sm:$0xff]   ;;  %v793_v13 = vld [vmem:[%s1025_s1 + $0x28] sm:$0xff]  }
   0x5   :  { %v791_v11 = vld [vmem:[%s1025_s1 + $0x20] sm:$0xff]   ;;  %749 = vmatpush3.bf16.msra.mxu1 %v796_v10  ;;  %v794_v14 = vld [vmem:[%s1025_s1 + $0x70] sm:$0xff]   ;;  %v802_v16 = vld [vmem:[%s1025_s1 + $0x88] sm:$0xff]  }
   0x6   :  { %750 = vmatprep.subr.bf16.mxu1 %v827_v1  ;;  %v801_v15 = vld [vmem:[%s1026_s0 + $0x4] ss:$12 sps:$4 sm:$0xff]   ;;  %v803_v17 = vld [vmem:[%s1026_s0 + $0x8] ss:$12 sps:$4 sm:$0xff]   ;;  %v797_v19 = vld [vmem:[%s1025_s1 + $0x78] sm:$0xff]  }
   0x7   :  { %684 = vmatpush3.bf16.msra.mxu0 %v785_v4  ;;  %346 = vmatprep.mubr.bf16.mxu0 %v801_v15  ;;  %v795_v18 = vld [vmem:[%s1025_s1 + $0x30] sm:$0xff]   ;;  %v798_v20 = vld [vmem:[%s1025_s1 + $0x38] sm:$0xff]   ;;  %v807_v21 = vld [vmem:[%s1026_s0 + $0x20] ss:$12 sps:$4 sm:$0xff]  }
   0x8   :  { %685 = vmatprep.subr.bf16.mxu0 %v786_v5  ;;  %v799_v22 = vld [vmem:[%s1026_s0] ss:$12 sps:$4 sm:$0xff]   ;;  %v804_v23 = vld [vmem:[%s1026_s0 + $0x1c] ss:$12 sps:$4 sm:$0xff]   ;;  %v811_v24 = vld [vmem:[%s1026_s0 + $0x38] ss:$12 sps:$4 sm:$0xff]  }
   0x9   :  { %751 = vmatpush3.bf16.msra.mxu1 %v802_v16  ;;  %v806_v25 = vld [vmem:[%s1026_s0 + $0x18] ss:$12 sps:$4 sm:$0xff]   ;;  %v808_v26 = vld [vmem:[%s1026_s0 + $0x34] ss:$12 sps:$4 sm:$0xff]   ;;  %v815_v27 = vld [vmem:[%s1026_s0 + $0x50] ss:$12 sps:$4 sm:$0xff]  }
   0xa   :  { %v810_v28 = vld [vmem:[%s1026_s0 + $0x30] ss:$12 sps:$4 sm:$0xff]   ;;  %v812_v29 = vld [vmem:[%s1026_s0 + $0x4c] ss:$12 sps:$4 sm:$0xff]   ;;  %v819_v30 = vld [vmem:[%s1026_s0 + $0x68] ss:$12 sps:$4 sm:$0xff]  }
   0xb   :  { %686 = vmatpush3.bf16.msra.mxu0 %v787_v6  ;;  %v814_v31 = vld [vmem:[%s1026_s0 + $0x48] ss:$12 sps:$4 sm:$0xff]   ;;  %v816_v32 = vld [vmem:[%s1026_s0 + $0x64] ss:$12 sps:$4 sm:$0xff]   ;;  %v823_v33 = vld [vmem:[%s1026_s0 + $0x80] ss:$12 sps:$4 sm:$0xff]  }
   0xc   :  { %687 = vmatprep.subr.bf16.mxu0 %v788_v7  ;;  %753 = vmatmul.mubr.msk.bf16.vlgmr.msra.gmra.mrb[0].mxu1 %vm292_vm1, %v803_v17  ;;  %v818_v34 = vld [vmem:[%s1026_s0 + $0x60] ss:$12 sps:$4 sm:$0xff]   ;;  %v820_v35 = vld [vmem:[%s1026_s0 + $0x7c] ss:$12 sps:$4 sm:$0xff]   ;;  %v39_v36 = vld [vmem:[%s1026_s0 + $0x90] sm:$0x11] }
   0xd   :  { %756 = vmatprep.mubr.msk.bf16.mxu1 %vm828_vm0, %v827_v1  ;;  %v826_v37 = vld [vmem:[%s1026_s0 + $0x98] ss:$0 sps:$4 sm:$0x11]   ;;  %v593_v39 = vcombine.high %v39_v36, %v39_v36  ;;  %v592_v40 = vcombine.low %v39_v36, %v39_v36  ;;  %v989_v50 = vld [vmem:[%s1027_s2] ss:$0 sm:$0xff] }
   0xe   :  { %v822_v38 = vld [vmem:[%s1026_s0 + $0x78] ss:$12 sps:$4 sm:$0xff]  }
   0xf   :  { %688 = vmatpush3.bf16.msra.mxu0 %v789_v8 }
  0x10   :  { %689 = vmatprep.subr.bf16.mxu0 %v790_v9 }
  0x13   :  { %690 = vmatpush3.bf16.msra.mxu0 %v791_v11 }
  0x14   :  { %691 = vmatprep.subr.bf16.mxu0 %v792_v12  ;;  %757 = vmatmul.mubr.msk.bf16.gmra.mrb[4].mxu1 %vm292_vm1, %v807_v21 }
  0x15   :  { %760 = vmatprep.mubr.msk.bf16.mxu1 %vm828_vm0, %v827_v1 }
  0x17   :  { %692 = vmatpush3.bf16.msra.mxu0 %v793_v13 }
  0x18   :  { %693 = vmatprep.subr.bf16.mxu0 %v794_v14 }
  0x1b   :  { %694 = vmatpush3.bf16.msra.mxu0 %v795_v18 }
  0x1c   :  { %695 = vmatprep.subr.bf16.mxu0 %v797_v19  ;;  %761 = vmatmul.mubr.msk.bf16.gmra.mrb[8].mxu1 %vm292_vm1, %v811_v24 }
  0x1d   :  { %764 = vmatprep.mubr.msk.bf16.mxu1 %vm828_vm0, %v827_v1 }
  0x1f   :  { %696 = vmatpush3.bf16.msra.mxu0 %v798_v20 }
  0x22   :  { %347 = vmatmul.mubr.bf16.vlgmr.msra.gmra.mrb[0].mxu0 %v799_v22 }
  0x23   :  { %354 = vmatprep.mubr.bf16.mxu0 %v804_v23 }
  0x24   :  { %765 = vmatmul.mubr.msk.bf16.gmra.mrb[12].mxu1 %vm292_vm1, %v815_v27 }
  0x25   :  { %768 = vmatprep.mubr.msk.bf16.mxu1 %vm828_vm0, %v827_v1 }
  0x2a   :  { %355 = vmatmul.mubr.bf16.gmra.mrb[4].mxu0 %v806_v25 }
  0x2b   :  { %362 = vmatprep.mubr.bf16.mxu0 %v808_v26 }
  0x2c   :  { %769 = vmatmul.mubr.msk.bf16.gmra.mrb[16].mxu1 %vm292_vm1, %v819_v30 }
  0x2d   :  { %772 = vmatprep.mubr.msk.bf16.mxu1 %vm828_vm0, %v827_v1 }
  0x32   :  { %363 = vmatmul.mubr.bf16.gmra.mrb[8].mxu0 %v810_v28 }
  0x33   :  { %370 = vmatprep.mubr.bf16.mxu0 %v812_v29 }
  0x34   :  { %773 = vmatmul.mubr.msk.bf16.gmra.mrb[20].mxu1 %vm292_vm1, %v823_v33 }
  0x35   :  { %776 = vmatprep.mubr.msk.bf16.mxu1 %vm828_vm0, %v827_v1 }
  0x3a   :  { %371 = vmatmul.mubr.bf16.gmra.mrb[12].mxu0 %v814_v31 }
  0x3b   :  { %378 = vmatprep.mubr.bf16.mxu0 %v816_v32 }
  0x3c   :  { %777 = vmatmul.mubr.msk.bf16.gmra.mrb[24].mxu1 %vm292_vm1, %v826_v37 }
  0x42   :  { %379 = vmatmul.mubr.bf16.gmra.mrb[16].mxu0 %v818_v34 }
  0x43   :  { %386 = vmatprep.mubr.bf16.mxu0 %v820_v35 }
  0x4a   :  { %387 = vmatmul.mubr.bf16.gmra.mrb[20].mxu0 %v822_v38 }
  0x4b   :  { %394 = vmatprep.mubr.bf16.mxu0 %v593_v39 }
  0x52   :  { %395 = vmatmul.mubr.bf16.gmra.mrb[24].mxu0 %v592_v40 }
  0xdf   :  { %v436_v41 = vpop.f32.mrb[0].mxu1 }
  0xe0   :  { %v754_v42 = vpop.f32.mrb[1].mxu1 }
  0xe1   :  { %v439_v43 = vpop.f32.mrb[2].mxu1 }
  0xe2   :  { %v755_v44 = vpop.f32.mrb[3].mxu1 }
  0xe7   :  { %v444_v45 = vpop.f32.mrb[4].mxu1 }
  0xe8   :  { %v758_v46 = vpop.f32.mrb[5].mxu1 }
  0xe9   :  { %v447_v48 = vpop.f32.mrb[6].mxu1 }
  0xea   :  { %v759_v51 = vpop.f32.mrb[7].mxu1 }
  0xef   :  { %v452_v59 = vpop.f32.mrb[8].mxu1 }
  0xf0   :  { %v762_v60 = vpop.f32.mrb[9].mxu1 }
  0xf1   :  { %v455_v63 = vpop.f32.mrb[10].mxu1 }
  0xf2   :  { %v763_v1 = vpop.f32.mrb[11].mxu1 }
  0xf5   :  { %v697_v47 = vpop.f32.mrb[0].mxu0 }
  0xf6   :  { %v698_v49 = vpop.f32.mrb[1].mxu0 }
  0xf7   :  { %v699_v52 = vadd.f32 %v698_v49, %v697_v47  ;;  %v700_v53 = vpop.f32.mrb[2].mxu0  ;;  %v460_v12 = vpop.f32.mrb[12].mxu1 }
  0xf8   :  { %v701_v54 = vpop.f32.mrb[3].mxu0  ;;  %v766_v13 = vpop.f32.mrb[13].mxu1 }
  0xf9   :  { %v349_v55 = vadd.f32 %v699_v52, %v989_v50  ;;  %v702_v56 = vadd.f32 %v701_v54, %v700_v53  ;;  %v463_v16 = vpop.f32.mrb[14].mxu1 }
  0xfa   :  { %v767_v18 = vpop.f32.mrb[15].mxu1 }
  0xfb   :  { %v437_v57 = vadd.f32 %v436_v41, %v349_v55  ;;  %v352_v58 = vadd.f32 %v702_v56, %v989_v50 }
  0xfd   :  { %v440_v61 = vadd.f32 %v439_v43, %v352_v58  ;;  %v703_v62 = vpop.f32.mrb[4].mxu0  ;;  %v490_v2 = vmax.f32 %v437_v57, 0.0 }
  0xfe   :  { %v704_v0 = vpop.f32.mrb[5].mxu0 }
  0xff   :  { %v491_v3 = vmax.f32 %v440_v61, 0.0  ;;  %v705_v4 = vadd.f32 %v704_v0, %v703_v62  ;;  %v706_v5 = vpop.f32.mrb[6].mxu0  ;;  %v468_v29 = vpop.f32.mrb[16].mxu1 }
 0x100   :  { %v707_v6 = vpop.f32.mrb[7].mxu0  ;;  %v770_v30 = vpop.f32.mrb[17].mxu1 }
 0x101   :  { %v649_v7 = vpack.c.bf16 %v491_v3, %v490_v2  ;;  %v357_v8 = vadd.f32 %v705_v4, %v989_v50  ;;  %v708_v9 = vadd.f32 %v707_v6, %v706_v5  ;;  %v471_v33 = vpop.f32.mrb[18].mxu1 }
 0x102   :  { %v771_v35 = vpop.f32.mrb[19].mxu1 }
 0x103   :  { %650 = vst [vmem:[%s1028_s3] sm:$0xff] %v649_v7   ;;  %v445_v10 = vadd.f32 %v444_v45, %v357_v8  ;;  %v360_v11 = vadd.f32 %v708_v9, %v989_v50 }
 0x105   :  { %v448_v14 = vadd.f32 %v447_v48, %v360_v11  ;;  %v709_v15 = vpop.f32.mrb[8].mxu0  ;;  %v492_v19 = vmax.f32 %v445_v10, 0.0 }
 0x106   :  { %v710_v17 = vpop.f32.mrb[9].mxu0 }
 0x107   :  { %v493_v20 = vmax.f32 %v448_v14, 0.0  ;;  %v711_v21 = vadd.f32 %v710_v17, %v709_v15  ;;  %v712_v22 = vpop.f32.mrb[10].mxu0  ;;  %v476_v46 = vpop.f32.mrb[20].mxu1 }
 0x108   :  { %v713_v23 = vpop.f32.mrb[11].mxu0  ;;  %v774_v47 = vpop.f32.mrb[21].mxu1 }
 0x109   :  { %v654_v24 = vpack.c.bf16 %v493_v20, %v492_v19  ;;  %v365_v25 = vadd.f32 %v711_v21, %v989_v50  ;;  %v714_v26 = vadd.f32 %v713_v23, %v712_v22  ;;  %v479_v51 = vpop.f32.mrb[22].mxu1 }
 0x10a   :  { %v775_v53 = vpop.f32.mrb[23].mxu1 }
 0x10b   :  { %676 = vst [vmem:[%s1028_s3 + $0x8] sm:$0xff] %v654_v24   ;;  %v453_v27 = vadd.f32 %v452_v59, %v365_v25  ;;  %v368_v28 = vadd.f32 %v714_v26, %v989_v50 }
 0x10d   :  { %v456_v31 = vadd.f32 %v455_v63, %v368_v28  ;;  %v715_v32 = vpop.f32.mrb[12].mxu0  ;;  %v494_v36 = vmax.f32 %v453_v27, 0.0 }
 0x10e   :  { %v716_v34 = vpop.f32.mrb[13].mxu0 }
 0x10f   :  { %v495_v37 = vmax.f32 %v456_v31, 0.0  ;;  %v717_v38 = vadd.f32 %v716_v34, %v715_v32  ;;  %v718_v39 = vpop.f32.mrb[14].mxu0  ;;  %v484_v0 = vpop.f32.mrb[24].mxu1 }
 0x110   :  { %v719_v40 = vpop.f32.mrb[15].mxu0  ;;  %v778_v1 = vpop.f32.mrb[25].mxu1 }
 0x111   :  { %v659_v41 = vpack.c.bf16 %v495_v37, %v494_v36  ;;  %v373_v42 = vadd.f32 %v717_v38, %v989_v50  ;;  %v720_v43 = vadd.f32 %v719_v40, %v718_v39  ;;  %v487_v4 = vpop.f32.mrb[26].mxu1 }
 0x112   :  { %v779_v6 = vpop.f32.mrb[27].mxu1 }
 0x113   :  { %677 = vst [vmem:[%s1028_s3 + $0x10] sm:$0xff] %v659_v41   ;;  %v461_v44 = vadd.f32 %v460_v12, %v373_v42  ;;  %v376_v45 = vadd.f32 %v720_v43, %v989_v50 }
 0x115   :  { %v464_v48 = vadd.f32 %v463_v16, %v376_v45  ;;  %v721_v49 = vpop.f32.mrb[16].mxu0  ;;  %v496_v54 = vmax.f32 %v461_v44, 0.0 }
 0x116   :  { %v722_v52 = vpop.f32.mrb[17].mxu0 }
 0x117   :  { %v497_v55 = vmax.f32 %v464_v48, 0.0  ;;  %v723_v56 = vadd.f32 %v722_v52, %v721_v49  ;;  %v724_v57 = vpop.f32.mrb[18].mxu0 }
 0x118   :  { %v725_v58 = vpop.f32.mrb[19].mxu0 }
 0x119   :  { %v664_v59 = vpack.c.bf16 %v497_v55, %v496_v54  ;;  %v381_v60 = vadd.f32 %v723_v56, %v989_v50  ;;  %v726_v61 = vadd.f32 %v725_v58, %v724_v57 }
 0x11b   :  { %678 = vst [vmem:[%s1028_s3 + $0x18] sm:$0xff] %v664_v59   ;;  %v469_v62 = vadd.f32 %v468_v29, %v381_v60  ;;  %v384_v63 = vadd.f32 %v726_v61, %v989_v50 }
 0x11d   :  { %v472_v2 = vadd.f32 %v471_v33, %v384_v63  ;;  %v727_v3 = vpop.f32.mrb[20].mxu0  ;;  %v498_v7 = vmax.f32 %v469_v62, 0.0 }
 0x11e   :  { %v728_v5 = vpop.f32.mrb[21].mxu0 }
 0x11f   :  { %v499_v8 = vmax.f32 %v472_v2, 0.0  ;;  %v729_v9 = vadd.f32 %v728_v5, %v727_v3  ;;  %v730_v10 = vpop.f32.mrb[22].mxu0 }
 0x120   :  { %v731_v11 = vpop.f32.mrb[23].mxu0 }
 0x121   :  { %v669_v12 = vpack.c.bf16 %v499_v8, %v498_v7  ;;  %v389_v13 = vadd.f32 %v729_v9, %v989_v50  ;;  %v732_v14 = vadd.f32 %v731_v11, %v730_v10 }
 0x123   :  { %679 = vst [vmem:[%s1028_s3 + $0x20] sm:$0xff] %v669_v12   ;;  %v477_v15 = vadd.f32 %v476_v46, %v389_v13  ;;  %v392_v16 = vadd.f32 %v732_v14, %v989_v50 }
 0x125   :  { %v480_v17 = vadd.f32 %v479_v51, %v392_v16  ;;  %v733_v18 = vpop.f32.mrb[24].mxu0  ;;  %v500_v20 = vmax.f32 %v477_v15, 0.0 }
 0x126   :  { %v734_v19 = vpop.f32.mrb[25].mxu0 }
 0x127   :  { %v501_v21 = vmax.f32 %v480_v17, 0.0  ;;  %v735_v22 = vadd.f32 %v734_v19, %v733_v18  ;;  %v736_v23 = vpop.f32.mrb[26].mxu0 }
 0x128   :  { %v737_v24 = vpop.f32.mrb[27].mxu0 }
 0x129   :  { %v674_v25 = vpack.c.bf16 %v501_v21, %v500_v20  ;;  %v397_v26 = vadd.f32 %v735_v22, %v989_v50 }
 0x12b   :  { %680 = vst [vmem:[%s1028_s3 + $0x28] sm:$0xff] %v674_v25   ;;  %v485_v27 = vadd.f32 %v484_v0, %v397_v26 }
 0x12d   :  { %v502_v28 = vmax.f32 %v485_v27, 0.0 }
 0x12f   :  { %v645_v29 = vpack.c.bf16 %v502_v28, %v502_v28 }
 0x131   :  { %568 = vst [vmem:[%s1028_s3 + $0x30] sm:$0x1] %v645_v29 }

// kernel: vaecnn_forward.9
= control target key start
LH: loop header
LB: loop body
LE: loop exit
PB: predicated region body
PF: predicated region fallthrough
CT: control target
= control target key end

     0   :  { %s1486_s12 = smov 0   ;;  %s1488_s13 = smov 0   ;;  %s1782_s0 = inlined_call_operand.vmem [shape: bf16[392,128], index: 0, kind: input, shape index: {}]   ;;  %s1783_s1 = inlined_call_operand.vmem [shape: bf16[128,128], index: 1, kind: input, shape index: {}]   ;;  %s1784_s2 = inlined_call_operand.vmem [shape: f32[1,128], index: 2, kind: input, shape index: {}]   ;;  %s1785_s3 = inlined_call_operand.vmem [shape: f32[392,128], index: 3, kind: output, shape index: {}]  }
   0x1   :  { %s1490_s14 = smov 0  }
   0x2 LB: > { %s1499_s15 = sadd.s32 4294967295, %s1430_s14   ;;  %s1501_s16 = sadd.s32 1, %s1430_s14   ;;  %s1430_s14 = sphi %s1490_s14, %s1794_s14   ;;  %s1426_s13 = sphi %s1488_s13, %s1793_s13   ;;  %s1422_s12 = sphi %s1486_s12, %s1792_s12  }
   0x3   : > { %s85_s17 = ssub.s32 %s1430_s14, %s1501_s16  ;;  %s88_s18 = sadd.s32 1, %s1426_s13 }
   0x4   : > { %p86_p0 = scmp.eq.s32.totalorder %s85_s17, 0  ;;  %p98_p1 = scmp.ne.s32.totalorder %s1426_s13, %s1422_s12 }
   0x5   : > { %p99_p2 = scmp.eq.s32.totalorder %s1499_s15, 1  ;;  %p992_p3 = scmp.ge.s32.totalorder %s1430_s14, 1 }
   0x6   : > { %s1509_s19 = scalar_select %p86_p0, %s1426_s13, %s88_s18  }
   0x7   : > { %p1511_p4 = por %p99_p2, %p98_p1  ;;  %p146_p5 = scmp.lt.s32.totalorder %s1430_s14, 3 }
   0x9   : > { %p147_p6 = pnand %p992_p3, %p146_p5 }
   0xa   : > { %v1251_v0 = vld [vmem:[%s1783_s1] sm:$0xff] (!%p147_p6)   ;;  %v1464_v1 = vmov (!%p147_p6), 0.0   ;;  %v1252_v2 = vld [vmem:[%s1783_s1 + $0x8] sm:$0xff] (!%p147_p6)   ;;  %s1524_s25 = smul.u32 (!%p147_p6), 25, %s1499_s15  ;;  %vm1465_vm0 = vmmov (!%p147_p6), 0   ;;  %v1253_v3 = vld [vmem:[%s1783_s1 + $0x10] sm:$0xff] (!%p147_p6)  }
   0xb   : > { %150 = sbr.rel (%p147_p6) target bundleno = 403 (0x193), region = 32  ;;  %1075 = vmatprep.subr.bf16.mxu0 (!%p147_p6), %v1464_v1  ;;  %1143 = vmatprep.subr.bf16.mxu1 (!%p147_p6), %v1464_v1  ;;  %v1254_v4 = vld [vmem:[%s1783_s1 + $0x18] sm:$0xff] (!%p147_p6)   ;;  %v1255_v5 = vld [vmem:[%s1783_s1 + $0x20] sm:$0xff] (!%p147_p6)   ;;  %v1256_v6 = vld [vmem:[%s1783_s1 + $0x28] sm:$0xff] (!%p147_p6)   ;;  %s170_s24 = sand.u32 (!%p147_p6), 1, %s1422_s12  }
   0xc   : > { %1076 = vmatpush3.bf16.msra.mxu0 (!%p147_p6), %v1251_v0  ;;  %1151 = vmatpush3.bf16.msra.mxu1 (!%p147_p6), %v1251_v0  ;;  %p178_p7 = scmp.lt.s32.totalorder (!%p147_p6), %s1524_s25, 48  ;;  %v1257_v7 = vld [vmem:[%s1783_s1 + $0x30] sm:$0xff] (!%p147_p6)   ;;  %v1258_v8 = vld [vmem:[%s1783_s1 + $0x38] sm:$0xff] (!%p147_p6)   ;;  %v1607_v22 = vld [vmem:[%s1784_s2] ss:$0 sm:$0xff] (!%p147_p6)  ;;  %s1622_s26 = smul.u32 (!%p147_p6), 200, %s170_s24 }
   0xd   : > { %1077 = vmatprep.subr.bf16.mxu0 (!%p147_p6), %v1464_v1  ;;  %1144 = vmatprep.subr.bf16.mxu1 (!%p147_p6), %v1464_v1 }
   0xe   : > { %1091 = vmatprep.mubr.msk.bf16.mxu0 (!%p147_p6), %vm1465_vm0, %v1464_v1  ;;  %1119 = vmatprep.mubr.msk.bf16.mxu1 (!%p147_p6), %vm1465_vm0, %v1464_v1  ;;  %s1629_s12 = scalar_lea.vmem (!%p147_p6), [#allocation2], %s1622_s26  }
  0x10   : > { %1078 = vmatpush3.bf16.msra.mxu0 (!%p147_p6), %v1252_v2  ;;  %1152 = vmatpush3.bf16.msra.mxu1 (!%p147_p6), %v1252_v2 }
  0x11   : > { %1079 = vmatprep.subr.bf16.mxu0 (!%p147_p6), %v1464_v1  ;;  %1145 = vmatprep.subr.bf16.mxu1 (!%p147_p6), %v1464_v1 }
  0x12   : > { %s179_s28 = scalar_select %p178_p7, %s1524_s25, 48 }
  0x13   : > { %s684_s27 = ssub.s32 (%p1511_p4), 49, %s1524_s25 }
  0x14   : > { %s993_s29 = sshll.u32 %s179_s28, 2  ;;  %1080 = vmatpush3.bf16.msra.mxu0 %v1253_v3  ;;  %1153 = vmatpush3.bf16.msra.mxu1 %v1253_v3  ;;  %s1053_s28 = smul.u32 (%p1511_p4), 200, %s1499_s15 }
  0x15   : > { %s1542_s5 = scalar_lea.vmem %s1782_s0, %s993_s29  ;;  %1081 = vmatprep.subr.bf16.mxu0 %v1464_v1  ;;  %1146 = vmatprep.subr.bf16.mxu1 %v1464_v1  ;;  %p685_p8 = scmp.lt.s32.totalorder (%p1511_p4), %s684_s27, 25 }
  0x16   : > { %v1259_v9 = vld [vmem:[%s1542_s5] sm:$0xff]   ;;  %v1260_v10 = vld [vmem:[%s1542_s5 + $0x38] sm:$0xff]   ;;  %v1261_v11 = vld [vmem:[%s1542_s5 + $0x8] sm:$0xff]   ;;  %s1672_s4 = scalar_lea.vmem (%p1511_p4), %s1785_s3, %s1053_s28  }
  0x17   : > { %v1262_v12 = vld [vmem:[%s1542_s5 + $0x40] sm:$0xff]   ;;  %v1263_v13 = vld [vmem:[%s1542_s5 + $0x10] sm:$0xff]   ;;  %v1264_v14 = vld [vmem:[%s1542_s5 + $0x48] sm:$0xff]  }
  0x18   : > { %1082 = vmatpush3.bf16.msra.mxu0 %v1254_v4  ;;  %1154 = vmatpush3.bf16.msra.mxu1 %v1254_v4  ;;  %v1265_v15 = vld [vmem:[%s1542_s5 + $0x18] sm:$0xff]   ;;  %v1266_v16 = vld [vmem:[%s1542_s5 + $0x50] sm:$0xff]   ;;  %v1267_v17 = vld [vmem:[%s1542_s5 + $0x20] sm:$0xff]  }
  0x19   : > { %1083 = vmatprep.subr.bf16.mxu0 %v1464_v1  ;;  %1147 = vmatprep.subr.bf16.mxu1 %v1464_v1  ;;  %v1268_v18 = vld [vmem:[%s1542_s5 + $0x58] sm:$0xff]   ;;  %v1269_v19 = vld [vmem:[%s1542_s5 + $0x28] sm:$0xff]   ;;  %v1270_v20 = vld [vmem:[%s1542_s5 + $0x60] ss:$0 sps:$4 sm:$0xff]  }
  0x1a   : > { %v1271_v21 = vld [vmem:[%s1542_s5 + $0x30] sm:$0xff]  }
  0x1c   : > { %1084 = vmatpush3.bf16.msra.mxu0 %v1255_v5  ;;  %1155 = vmatpush3.bf16.msra.mxu1 %v1255_v5 }
  0x1d   : > { %1085 = vmatprep.subr.bf16.mxu0 %v1464_v1  ;;  %1148 = vmatprep.subr.bf16.mxu1 %v1464_v1 }
  0x20   : > { %1086 = vmatpush3.bf16.msra.mxu0 %v1256_v6  ;;  %1156 = vmatpush3.bf16.msra.mxu1 %v1256_v6 }
  0x21   : > { %1087 = vmatprep.subr.bf16.mxu0 %v1464_v1  ;;  %1149 = vmatprep.subr.bf16.mxu1 %v1464_v1 }
  0x24   : > { %1088 = vmatpush3.bf16.msra.mxu0 %v1257_v7  ;;  %1157 = vmatpush3.bf16.msra.mxu1 %v1257_v7 }
  0x25   : > { %1089 = vmatprep.subr.bf16.mxu0 %v1464_v1  ;;  %1150 = vmatprep.subr.bf16.mxu1 %v1464_v1 }
  0x28   : > { %1090 = vmatpush3.bf16.msra.mxu0 %v1258_v8  ;;  %1158 = vmatpush3.bf16.msra.mxu1 %v1258_v8 }
  0x2b   : > { %1092 = vmatmul.mubr.bf16.vlgmr.msra.gmra.mrb[0].mxu0 %v1259_v9  ;;  %1120 = vmatmul.mubr.bf16.vlgmr.msra.gmra.mrb[0].mxu1 %v1260_v10 }
  0x2c   : > { %1095 = vmatprep.mubr.msk.bf16.mxu0 %vm1465_vm0, %v1464_v1  ;;  %1123 = vmatprep.mubr.msk.bf16.mxu1 %vm1465_vm0, %v1464_v1 }
  0x33   : > { %1096 = vmatmul.mubr.bf16.gmra.mrb[4].mxu0 %v1261_v11  ;;  %1124 = vmatmul.mubr.bf16.gmra.mrb[4].mxu1 %v1262_v12 }
  0x34   : > { %1099 = vmatprep.mubr.msk.bf16.mxu0 %vm1465_vm0, %v1464_v1  ;;  %1127 = vmatprep.mubr.msk.bf16.mxu1 %vm1465_vm0, %v1464_v1 }
  0x3b   : > { %1100 = vmatmul.mubr.bf16.gmra.mrb[8].mxu0 %v1263_v13  ;;  %1128 = vmatmul.mubr.bf16.gmra.mrb[8].mxu1 %v1264_v14 }
  0x3c   : > { %1103 = vmatprep.mubr.msk.bf16.mxu0 %vm1465_vm0, %v1464_v1  ;;  %1131 = vmatprep.mubr.msk.bf16.mxu1 %vm1465_vm0, %v1464_v1 }
  0x43   : > { %1104 = vmatmul.mubr.bf16.gmra.mrb[12].mxu0 %v1265_v15  ;;  %1132 = vmatmul.mubr.bf16.gmra.mrb[12].mxu1 %v1266_v16 }
  0x44   : > { %1107 = vmatprep.mubr.msk.bf16.mxu0 %vm1465_vm0, %v1464_v1  ;;  %1135 = vmatprep.mubr.msk.bf16.mxu1 %vm1465_vm0, %v1464_v1 }
  0x4b   : > { %1108 = vmatmul.mubr.bf16.gmra.mrb[16].mxu0 %v1267_v17  ;;  %1136 = vmatmul.mubr.bf16.gmra.mrb[16].mxu1 %v1268_v18 }
  0x4c   : > { %1111 = vmatprep.mubr.msk.bf16.mxu0 %vm1465_vm0, %v1464_v1  ;;  %1139 = vmatprep.mubr.msk.bf16.mxu1 %vm1465_vm0, %v1464_v1 }
  0x53   : > { %1112 = vmatmul.mubr.bf16.gmra.mrb[20].mxu0 %v1269_v19  ;;  %1140 = vmatmul.mubr.bf16.gmra.mrb[20].mxu1 %v1270_v20 }
  0x54   : > { %1115 = vmatprep.mubr.msk.bf16.mxu0 %vm1465_vm0, %v1464_v1 }
  0x5b   : > { %1116 = vmatmul.mubr.bf16.gmra.mrb[24].mxu0 %v1271_v21 }
  0xfe   : > { %v399_v23 = vpop.f32.mrb[0].mxu0  ;;  %v455_v24 = vpop.f32.mrb[0].mxu1 }
  0xff   : > { %v400_v25 = vadd.f32 %v1607_v22, %v399_v23  ;;  %v1093_v26 = vpop.f32.mrb[1].mxu0  ;;  %v456_v27 = vadd.f32 %v1607_v22, %v455_v24  ;;  %v1121_v28 = vpop.f32.mrb[1].mxu1 }
 0x100   : > { %v402_v29 = vpop.f32.mrb[2].mxu0  ;;  %v458_v30 = vpop.f32.mrb[2].mxu1 }
 0x101   : > { %v1016_v31 = vmul.f32 -1.442695, %v400_v25  ;;  %v403_v32 = vadd.f32 %v1607_v22, %v402_v29  ;;  %v1094_v33 = vpop.f32.mrb[3].mxu0  ;;  %v1030_v34 = vmul.f32 -1.442695, %v456_v27  ;;  %v459_v35 = vadd.f32 %v1607_v22, %v458_v30  ;;  %v1122_v36 = vpop.f32.mrb[3].mxu1 }
 0x103   : > { %1272 = vpow2.f32 %v1016_v31  ;;  %v1017_v37 = vmul.f32 -1.442695, %v403_v32  ;;  %v1031_v38 = vmul.f32 -1.442695, %v459_v35 }
 0x104   : > { %1274 = vpow2.f32 %v1030_v34 }
 0x105   : > { %1276 = vpow2.f32 %v1017_v37 }
 0x106   : > { %v407_v39 = vpop.f32.mrb[4].mxu0  ;;  %1278 = vpow2.f32 %v1031_v38  ;;  %v463_v40 = vpop.f32.mrb[4].mxu1 }
 0x107   : > { %v408_v41 = vadd.f32 %v1607_v22, %v407_v39  ;;  %v1097_v42 = vpop.f32.mrb[5].mxu0  ;;  %v464_v43 = vadd.f32 %v1607_v22, %v463_v40  ;;  %v1125_v44 = vpop.f32.mrb[5].mxu1 }
 0x108   : > { %v410_v45 = vpop.f32.mrb[6].mxu0  ;;  %v466_v46 = vpop.f32.mrb[6].mxu1 }
 0x109   : > { %v1018_v47 = vmul.f32 -1.442695, %v408_v41  ;;  %v411_v48 = vadd.f32 %v1607_v22, %v410_v45  ;;  %v1098_v49 = vpop.f32.mrb[7].mxu0  ;;  %v1032_v50 = vmul.f32 -1.442695, %v464_v43  ;;  %v467_v51 = vadd.f32 %v1607_v22, %v466_v46  ;;  %v1126_v52 = vpop.f32.mrb[7].mxu1 }
 0x10b   : > { %1280 = vpow2.f32 %v1018_v47  ;;  %v1019_v53 = vmul.f32 -1.442695, %v411_v48  ;;  %v1033_v54 = vmul.f32 -1.442695, %v467_v51 }
 0x10c   : > { %1282 = vpow2.f32 %v1032_v50 }
 0x10d   : > { %v1273_v55 = vpop.eup %1272  ;;  %1284 = vpow2.f32 %v1019_v53 }
 0x10e   : > { %v1275_v56 = vpop.eup %1274  ;;  %v576_v57 = vadd.f32 1.0, %v1273_v55  ;;  %v415_v58 = vpop.f32.mrb[8].mxu0  ;;  %1286 = vpow2.f32 %v1033_v54 }
 0x10f   : > { %v471_v59 = vpop.f32.mrb[8].mxu1  ;;  %v1277_v60 = vpop.eup %1276  ;;  %v590_v61 = vadd.f32 1.0, %v1275_v56  ;;  %v416_v62 = vadd.f32 %v1607_v22, %v415_v58 }
 0x110   : > { %v1101_v63 = vpop.f32.mrb[9].mxu0  ;;  %v472_v0 = vadd.f32 %v1607_v22, %v471_v59  ;;  %v1129_v1 = vpop.f32.mrb[9].mxu1  ;;  %1288 = vrcp.f32 %v576_v57  ;;  %v577_v3 = vadd.f32 1.0, %v1277_v60 }
 0x111   : > { %v1279_v2 = vpop.eup %1278  ;;  %v418_v4 = vpop.f32.mrb[10].mxu0  ;;  %1290 = vrcp.f32 %v590_v61  ;;  %v1020_v7 = vmul.f32 -1.442695, %v416_v62 }
 0x112   : > { %v474_v5 = vpop.f32.mrb[10].mxu1  ;;  %v591_v6 = vadd.f32 1.0, %v1279_v2  ;;  %v419_v8 = vadd.f32 %v1607_v22, %v418_v4  ;;  %v1102_v9 = vpop.f32.mrb[11].mxu0  ;;  %1292 = vrcp.f32 %v577_v3  ;;  %v1034_v11 = vmul.f32 -1.442695, %v472_v0 }
 0x113   : > { %v1130_v10 = vpop.f32.mrb[11].mxu1  ;;  %v475_v12 = vadd.f32 %v1607_v22, %v474_v5 }
 0x114   : > { %1294 = vrcp.f32 %v591_v6  ;;  %v1021_v13 = vmul.f32 -1.442695, %v419_v8 }
 0x115   : > { %1296 = vpow2.f32 %v1020_v7  ;;  %v1035_v14 = vmul.f32 -1.442695, %v475_v12  ;;  %v1281_v15 = vpop.eup %1280 }
 0x116   : > { %1298 = vpow2.f32 %v1021_v13  ;;  %v1283_v16 = vpop.eup %1282  ;;  %v578_v17 = vadd.f32 1.0, %v1281_v15  ;;  %v423_v18 = vpop.f32.mrb[12].mxu0 }
 0x117   : > { %1300 = vpow2.f32 %v1034_v11  ;;  %v479_v19 = vpop.f32.mrb[12].mxu1  ;;  %v1285_v20 = vpop.eup %1284  ;;  %v592_v21 = vadd.f32 1.0, %v1283_v16  ;;  %v424_v23 = vadd.f32 %v1607_v22, %v423_v18 }
 0x118   : > { %v1105_v24 = vpop.f32.mrb[13].mxu0  ;;  %1302 = vpow2.f32 %v1035_v14  ;;  %v480_v25 = vadd.f32 %v1607_v22, %v479_v19  ;;  %v1133_v26 = vpop.f32.mrb[13].mxu1  ;;  %v579_v28 = vadd.f32 1.0, %v1285_v20 }
 0x119   : > { %v1287_v27 = vpop.eup %1286  ;;  %1304 = vrcp.f32 %v578_v17  ;;  %v426_v29 = vpop.f32.mrb[14].mxu0  ;;  %v1022_v32 = vmul.f32 -1.442695, %v424_v23 }
 0x11a   : > { %v482_v30 = vpop.f32.mrb[14].mxu1  ;;  %1306 = vrcp.f32 %v592_v21  ;;  %v593_v31 = vadd.f32 1.0, %v1287_v27  ;;  %v427_v33 = vadd.f32 %v1607_v22, %v426_v29  ;;  %v1106_v34 = vpop.f32.mrb[15].mxu0  ;;  %v1036_v37 = vmul.f32 -1.442695, %v480_v25 }
 0x11b   : > { %v1134_v35 = vpop.f32.mrb[15].mxu1  ;;  %v1289_v36 = vpop.eup %1288  ;;  %1308 = vrcp.f32 %v579_v28  ;;  %v483_v38 = vadd.f32 %v1607_v22, %v482_v30 }
 0x11c   : > { %v1291_v39 = vpop.eup %1290  ;;  %651 = vst [vmem:[%s1629_s12] sm:$0xff] %v1289_v36  ;;  %1310 = vrcp.f32 %v593_v31  ;;  %v1023_v40 = vmul.f32 -1.442695, %v427_v33 }
 0x11d   : > { %v1293_v41 = vpop.eup %1292  ;;  %665 = vst [vmem:[%s1629_s12 + $0x70] sm:$0xff] %v1291_v39  ;;  %1312 = vpow2.f32 %v1022_v32  ;;  %v1037_v42 = vmul.f32 -1.442695, %v483_v38 }
 0x11e   : > { %v1295_v43 = vpop.eup %1294  ;;  %652 = vst [vmem:[%s1629_s12 + $0x8] sm:$0xff] %v1293_v41  ;;  %1314 = vpow2.f32 %v1023_v40  ;;  %v431_v45 = vpop.f32.mrb[16].mxu0 }
 0x11f   : > { %v1297_v44 = vpop.eup %1296  ;;  %666 = vst [vmem:[%s1629_s12 + $0x78] sm:$0xff] %v1295_v43  ;;  %1316 = vpow2.f32 %v1036_v37  ;;  %v487_v46 = vpop.f32.mrb[16].mxu1  ;;  %v432_v49 = vadd.f32 %v1607_v22, %v431_v45 }
 0x120   : > { %v1299_v47 = vpop.eup %1298  ;;  %v580_v48 = vadd.f32 1.0, %v1297_v44  ;;  %v1109_v50 = vpop.f32.mrb[17].mxu0  ;;  %1318 = vpow2.f32 %v1037_v42  ;;  %v488_v51 = vadd.f32 %v1607_v22, %v487_v46 }
 0x121   : > { %v1137_v52 = vpop.f32.mrb[17].mxu1  ;;  %v1301_v53 = vpop.eup %1300  ;;  %v581_v54 = vadd.f32 1.0, %v1299_v47  ;;  %v1024_v59 = vmul.f32 -1.442695, %v432_v49 }
 0x122   : > { %v434_v55 = vpop.f32.mrb[18].mxu0  ;;  %v490_v56 = vpop.f32.mrb[18].mxu1  ;;  %1320 = vrcp.f32 %v580_v48  ;;  %v594_v58 = vadd.f32 1.0, %v1301_v53  ;;  %v1038_v4 = vmul.f32 -1.442695, %v488_v51 }
 0x123   : > { %v1303_v57 = vpop.eup %1302  ;;  %v435_v60 = vadd.f32 %v1607_v22, %v434_v55  ;;  %v1110_v61 = vpop.f32.mrb[19].mxu0  ;;  %1322 = vrcp.f32 %v581_v54  ;;  %v491_v1 = vadd.f32 %v1607_v22, %v490_v56 }
 0x124   : > { %v1138_v62 = vpop.f32.mrb[19].mxu1  ;;  %v1305_v63 = vpop.eup %1304  ;;  %v595_v0 = vadd.f32 1.0, %v1303_v57  ;;  %1324 = vrcp.f32 %v594_v58 }
 0x125   : > { %v1307_v2 = vpop.eup %1306  ;;  %653 = vst [vmem:[%s1629_s12 + $0x10] sm:$0xff] %v1305_v63  ;;  %v1025_v3 = vmul.f32 -1.442695, %v435_v60  ;;  %v1039_v6 = vmul.f32 -1.442695, %v491_v1 }
 0x126   : > { %v1309_v5 = vpop.eup %1308  ;;  %667 = vst [vmem:[%s1629_s12 + $0x80] sm:$0xff] %v1307_v2  ;;  %1326 = vrcp.f32 %v595_v0  ;;  %v439_v9 = vpop.f32.mrb[20].mxu0 }
 0x127   : > { %v1311_v7 = vpop.eup %1310  ;;  %654 = vst [vmem:[%s1629_s12 + $0x18] sm:$0xff] %v1309_v5  ;;  %1328 = vpow2.f32 %v1024_v59  ;;  %v495_v10 = vpop.f32.mrb[20].mxu1  ;;  %v440_v13 = vadd.f32 %v1607_v22, %v439_v9 }
 0x128   : > { %v1313_v8 = vpop.eup %1312  ;;  %668 = vst [vmem:[%s1629_s12 + $0x88] sm:$0xff] %v1311_v7  ;;  %1330 = vpow2.f32 %v1025_v3  ;;  %v1113_v14 = vpop.f32.mrb[21].mxu0  ;;  %v496_v15 = vadd.f32 %v1607_v22, %v495_v10 }
 0x129   : > { %v1315_v11 = vpop.eup %1314  ;;  %v582_v12 = vadd.f32 1.0, %v1313_v8  ;;  %1332 = vpow2.f32 %v1038_v4  ;;  %v1141_v16 = vpop.f32.mrb[21].mxu1  ;;  %v1026_v24 = vmul.f32 -1.442695, %v440_v13 }
 0x12a   : > { %v1317_v17 = vpop.eup %1316  ;;  %v583_v18 = vadd.f32 1.0, %v1315_v11  ;;  %1334 = vpow2.f32 %v1039_v6  ;;  %v442_v19 = vpop.f32.mrb[22].mxu0  ;;  %v1040_v31 = vmul.f32 -1.442695, %v496_v15 }
 0x12b   : > { %v498_v20 = vpop.f32.mrb[22].mxu1  ;;  %v1319_v21 = vpop.eup %1318  ;;  %1336 = vrcp.f32 %v582_v12  ;;  %v596_v23 = vadd.f32 1.0, %v1317_v17  ;;  %v443_v25 = vadd.f32 %v1607_v22, %v442_v19 }
 0x12c   : > { %v1114_v26 = vpop.f32.mrb[23].mxu0  ;;  %v1142_v27 = vpop.f32.mrb[23].mxu1  ;;  %1338 = vrcp.f32 %v583_v18  ;;  %v597_v28 = vadd.f32 1.0, %v1319_v21 }
 0x12d   : > { %v1321_v29 = vpop.eup %1320  ;;  %1340 = vrcp.f32 %v596_v23  ;;  %v1027_v30 = vmul.f32 -1.442695, %v443_v25 }
 0x12e   : > { %v1323_v32 = vpop.eup %1322  ;;  %655 = vst [vmem:[%s1629_s12 + $0x20] sm:$0xff] %v1321_v29  ;;  %1342 = vrcp.f32 %v597_v28  ;;  %v447_v35 = vpop.f32.mrb[24].mxu0 }
 0x12f   : > { %v1325_v33 = vpop.eup %1324  ;;  %656 = vst [vmem:[%s1629_s12 + $0x28] sm:$0xff] %v1323_v32  ;;  %1344 = vpow2.f32 %v1026_v24  ;;  %v448_v37 = vadd.f32 %v1607_v22, %v447_v35  ;;  %v1117_v38 = vpop.f32.mrb[25].mxu0 }
 0x130   : > { %v1327_v34 = vpop.eup %1326  ;;  %669 = vst [vmem:[%s1629_s12 + $0x90] sm:$0xff] %v1325_v33  ;;  %1346 = vpow2.f32 %v1027_v30  ;;  %v450_v41 = vpop.f32.mrb[26].mxu0 }
 0x131   : > { %v1329_v36 = vpop.eup %1328  ;;  %670 = vst [vmem:[%s1629_s12 + $0x98] sm:$0xff] %v1327_v34  ;;  %1348 = vpow2.f32 %v1040_v31  ;;  %v451_v44 = vadd.f32 %v1607_v22, %v450_v41  ;;  %v1118_v45 = vpop.f32.mrb[27].mxu0  ;;  %v1028_v48 = vmul.f32 -1.442695, %v448_v37 }
 0x132   : > { %v1331_v39 = vpop.eup %1330  ;;  %v584_v40 = vadd.f32 1.0, %v1329_v36 }
 0x133   : > { %v1333_v42 = vpop.eup %1332  ;;  %v585_v43 = vadd.f32 1.0, %v1331_v39  ;;  %v1029_v51 = vmul.f32 -1.442695, %v451_v44 }
 0x134   : > { %v1335_v46 = vpop.eup %1334  ;;  %1350 = vrcp.f32 %v584_v40  ;;  %v598_v47 = vadd.f32 1.0, %v1333_v42 }
 0x135   : > { %v1337_v49 = vpop.eup %1336  ;;  %1352 = vrcp.f32 %v585_v43  ;;  %v599_v50 = vadd.f32 1.0, %v1335_v46 }
 0x136   : > { %v1339_v52 = vpop.eup %1338  ;;  %657 = vst [vmem:[%s1629_s12 + $0x30] sm:$0xff] %v1337_v49  ;;  %1354 = vrcp.f32 %v598_v47 }
 0x137   : > { %v1341_v53 = vpop.eup %1340  ;;  %658 = vst [vmem:[%s1629_s12 + $0x38] sm:$0xff] %v1339_v52  ;;  %1356 = vrcp.f32 %v599_v50 }
 0x138   : > { %v1343_v54 = vpop.eup %1342  ;;  %671 = vst [vmem:[%s1629_s12 + $0xa0] sm:$0xff] %v1341_v53  ;;  %1358 = vpow2.f32 %v1028_v48 }
 0x139   : > { %v1345_v22 = vpop.eup %1344  ;;  %672 = vst [vmem:[%s1629_s12 + $0xa8] sm:$0xff] %v1343_v54  ;;  %1360 = vpow2.f32 %v1029_v51 }
 0x13a   : > { %v1347_v55 = vpop.eup %1346  ;;  %v586_v56 = vadd.f32 1.0, %v1345_v22 }
 0x13b   : > { %v1349_v57 = vpop.eup %1348  ;;  %v587_v58 = vadd.f32 1.0, %v1347_v55 }
 0x13c   : > { %1362 = vrcp.f32 %v586_v56  ;;  %v600_v59 = vadd.f32 1.0, %v1349_v57 }
 0x13d   : > { %1364 = vrcp.f32 %v587_v58 }
 0x13e   : > { %v1351_v60 = vpop.eup %1350  ;;  %1366 = vrcp.f32 %v600_v59 }
 0x13f   : > { %v1353_v61 = vpop.eup %1352  ;;  %659 = vst [vmem:[%s1629_s12 + $0x40] sm:$0xff] %v1351_v60 }
 0x140   : > { %v1355_v62 = vpop.eup %1354  ;;  %660 = vst [vmem:[%s1629_s12 + $0x48] sm:$0xff] %v1353_v61 }
 0x141   : > { %v1357_v63 = vpop.eup %1356  ;;  %673 = vst [vmem:[%s1629_s12 + $0xb0] sm:$0xff] %v1355_v62 }
 0x142   : > { %v1359_v0 = vpop.eup %1358  ;;  %674 = vst [vmem:[%s1629_s12 + $0xb8] sm:$0xff] %v1357_v63 }
 0x143   : > { %v1361_v1 = vpop.eup %1360  ;;  %v588_v2 = vadd.f32 1.0, %v1359_v0 }
 0x144   : > { %v589_v3 = vadd.f32 1.0, %v1361_v1 }
 0x145   : > { %1368 = vrcp.f32 %v588_v2 }
 0x146   : > { %v1363_v4 = vpop.eup %1362  ;;  %1370 = vrcp.f32 %v589_v3 }
 0x147   : > { %v1365_v5 = vpop.eup %1364  ;;  %661 = vst [vmem:[%s1629_s12 + $0x50] sm:$0xff] %v1363_v4 }
 0x148   : > { %v1367_v6 = vpop.eup %1366  ;;  %662 = vst [vmem:[%s1629_s12 + $0x58] sm:$0xff] %v1365_v5 }
 0x149   : > { %675 = vst [vmem:[%s1629_s12 + $0xc0] sm:$0xff] %v1367_v6 }
 0x14b   : > { %682 = sbr.rel (!%p1511_p4) target bundleno = 403 (0x193), region = 36 }
 0x14f   : > { %v1369_v7 = vpop.eup %1368 }
 0x150   : > { %v1371_v8 = vpop.eup %1370  ;;  %663 = vst [vmem:[%s1629_s12 + $0x60] sm:$0xff] %v1369_v7 }
 0x151   : > { %664 = vst [vmem:[%s1629_s12 + $0x68] sm:$0xff] %v1371_v8 }
 0x152   : > { %s1796_s27 = smov (!%p685_p8, %s684_s27), 25 }
 0x153   : > { %s1041_s5 = sshll.u32 %s1796_s27, 7 }
 0x154   : > { %p1044_p9 = scmp.eq.s32.totalorder %s1041_s5, 0 }
 0x155   : > { %1372 = sdivrem.u32 (!%p1044_p9), %s1796_s27, 25 }
 0x156   : > { %693 = sbr.rel (%p1044_p9) target bundleno = 403 (0x193), region = 40 }
 0x15e   : > { %s1678_s20 = spop.drf %1372 }
 0x15f   : > { %p1045_p10 = scmp.le.s32.totalorder %s1678_s20, 0 }
 0x160   : > { %s1787_s15 = smov (!%p1045_p10), %s1672_s4  ;;  %s1788_s25 = smov (!%p1045_p10), %s1629_s12 }
 0x161   : > { %945 = sbr.rel (%p1045_p10) target bundleno = 374 (0x176), region = 116  ;;  %s1687_s6 = smov (!%p1045_p10), 0  }
 0x162   : > { %s1689_s7 = smov (!%p1045_p10), 0  }
 0x168 LB: >> { %v805_v9 = vld [vmem:[%s1438_s25] sm:$0xff]  ;;  %v807_v10 = vld [vmem:[%s1438_s25 + $0x8] sm:$0xff]  ;;  %v809_v11 = vld [vmem:[%s1438_s25 + $0x10] sm:$0xff]  ;;  %s855_s8 = sadd.s32 1, %s1442_s6  ;;  %s799_s7 = sadd.s32 1, %s1446_s7   ;;  %s1446_s7 = sphi %s1689_s7, %s799_s7   ;;  %s1442_s6 = sphi %s1687_s6, %s1791_s6   ;;  %s1438_s25 = sphi %s1788_s25, %s1790_s25   ;;  %s1434_s15 = sphi %s1787_s15, %s1789_s15  }
 0x169   : >> { %806 = vst [vmem:[%s1434_s15] sm:$0xff] %v805_v9  ;;  %808 = vst [vmem:[%s1434_s15 + $0x8] sm:$0xff] %v807_v10  ;;  %v811_v12 = vld [vmem:[%s1438_s25 + $0x18] sm:$0xff]  ;;  %v813_v13 = vld [vmem:[%s1438_s25 + $0x20] sm:$0xff]  ;;  %p856_p11 = scmp.ge.s32.totalorder %s855_s8, %s1678_s20  ;;  %p798_p12 = scmp.ge.s32.totalorder %s799_s7, %s1678_s20 }
 0x16a   : >> { %810 = vst [vmem:[%s1434_s15 + $0x10] sm:$0xff] %v809_v11  ;;  %v815_v14 = vld [vmem:[%s1438_s25 + $0x28] sm:$0xff]  ;;  %812 = vst [vmem:[%s1434_s15 + $0x18] sm:$0xff] %v811_v12  ;;  %v817_v15 = vld [vmem:[%s1438_s25 + $0x30] sm:$0xff] }
 0x16b   : >> { %814 = vst [vmem:[%s1434_s15 + $0x20] sm:$0xff] %v813_v13  ;;  %816 = vst [vmem:[%s1434_s15 + $0x28] sm:$0xff] %v815_v14  ;;  %v819_v16 = vld [vmem:[%s1438_s25 + $0x38] sm:$0xff]  ;;  %v821_v17 = vld [vmem:[%s1438_s25 + $0x40] sm:$0xff]  ;;  %s1798_s8 = smov (%p856_p11, %s855_s8), 0 }
 0x16c   : >> { %818 = vst [vmem:[%s1434_s15 + $0x30] sm:$0xff] %v817_v15  ;;  %820 = vst [vmem:[%s1434_s15 + $0x38] sm:$0xff] %v819_v16  ;;  %v823_v18 = vld [vmem:[%s1438_s25 + $0x48] sm:$0xff]  ;;  %v825_v19 = vld [vmem:[%s1438_s25 + $0x50] sm:$0xff]  ;;  %s858_s9 = smul.u32 200, %s1798_s8  ;;  %s1791_s6 = smov %s1798_s8 }
 0x16d   : >> { %822 = vst [vmem:[%s1434_s15 + $0x40] sm:$0xff] %v821_v17  ;;  %v827_v20 = vld [vmem:[%s1438_s25 + $0x58] sm:$0xff]  ;;  %824 = vst [vmem:[%s1434_s15 + $0x48] sm:$0xff] %v823_v18  ;;  %v829_v21 = vld [vmem:[%s1438_s25 + $0x60] sm:$0xff] }
 0x16e   : >> { %826 = vst [vmem:[%s1434_s15 + $0x50] sm:$0xff] %v825_v19  ;;  %828 = vst [vmem:[%s1434_s15 + $0x58] sm:$0xff] %v827_v20  ;;  %v831_v23 = vld [vmem:[%s1438_s25 + $0x68] sm:$0xff]  ;;  %v833_v24 = vld [vmem:[%s1438_s25 + $0x70] sm:$0xff]  ;;  %s860_s10 = scalar_lea.vmem %s1629_s12, %s858_s9 [#allocation2]   ;;  %s861_s11 = scalar_lea.vmem %s1672_s4, %s858_s9  }
 0x16f   : >> { %830 = vst [vmem:[%s1434_s15 + $0x60] sm:$0xff] %v829_v21  ;;  %832 = vst [vmem:[%s1434_s15 + $0x68] sm:$0xff] %v831_v23  ;;  %v835_v25 = vld [vmem:[%s1438_s25 + $0x78] sm:$0xff]  ;;  %v837_v26 = vld [vmem:[%s1438_s25 + $0x80] sm:$0xff]  ;;  %801 = sbr.rel (!%p798_p12) target bundleno = 360 (0x168), region = 122 }
 0x170   : >> { %834 = vst [vmem:[%s1434_s15 + $0x70] sm:$0xff] %v833_v24  ;;  %v839_v27 = vld [vmem:[%s1438_s25 + $0x88] sm:$0xff]  ;;  %836 = vst [vmem:[%s1434_s15 + $0x78] sm:$0xff] %v835_v25  ;;  %v841_v28 = vld [vmem:[%s1438_s25 + $0x90] sm:$0xff] }
 0x171   : >> { %838 = vst [vmem:[%s1434_s15 + $0x80] sm:$0xff] %v837_v26  ;;  %840 = vst [vmem:[%s1434_s15 + $0x88] sm:$0xff] %v839_v27  ;;  %v843_v29 = vld [vmem:[%s1438_s25 + $0x98] sm:$0xff]  ;;  %v845_v30 = vld [vmem:[%s1438_s25 + $0xa0] sm:$0xff] }
 0x172   : >> { %842 = vst [vmem:[%s1434_s15 + $0x90] sm:$0xff] %v841_v28  ;;  %844 = vst [vmem:[%s1434_s15 + $0x98] sm:$0xff] %v843_v29  ;;  %v847_v31 = vld [vmem:[%s1438_s25 + $0xa8] sm:$0xff]  ;;  %v849_v32 = vld [vmem:[%s1438_s25 + $0xb0] sm:$0xff] }
 0x173   : >> { %846 = vst [vmem:[%s1434_s15 + $0xa0] sm:$0xff] %v845_v30  ;;  %v851_v33 = vld [vmem:[%s1438_s25 + $0xb8] sm:$0xff]  ;;  %848 = vst [vmem:[%s1434_s15 + $0xa8] sm:$0xff] %v847_v31  ;;  %v853_v34 = vld [vmem:[%s1438_s25 + $0xc0] sm:$0xff]  ;;  %s1790_s25 = smov %s860_s10 }
 0x174   : >> { %850 = vst [vmem:[%s1434_s15 + $0xb0] sm:$0xff] %v849_v32  ;;  %852 = vst [vmem:[%s1434_s15 + $0xb8] sm:$0xff] %v851_v33 }
 0x175   : >> { %854 = vst [vmem:[%s1434_s15 + $0xc0] sm:$0xff] %v853_v34  ;;  %s1789_s15 = smov %s861_s11 }
 0x176 PF: > { %1374 = sdivrem.u32 %s1796_s27, 25 }
 0x177   : > { %s1046_s14 = smul.u32 200, %s1678_s20 }
 0x179   : > { %s866_s17 = scalar_lea.vmem %s1629_s12, %s1046_s14 [#allocation2]   ;;  %s868_s18 = scalar_lea.vmem %s1672_s4, %s1046_s14  }
 0x17f   : > { %s1375_s21 = spop.drf %1374 }
 0x180   : > { %p1048_p13 = scmp.le.s32.totalorder %s1375_s21, 0 }
 0x181   : > { %s1448_s22 = smov (!%p1048_p13), %s868_s18   ;;  %s1452_s23 = smov (!%p1048_p13), %s866_s17  }
 0x182   : > { %959 = sbr.rel (%p1048_p13) target bundleno = 403 (0x193), region = 127  ;;  %s1456_s24 = smov (!%p1048_p13), 0  }
 0x183   : > { %s1460_s26 = smov (!%p1048_p13), 0  }
 0x189 LB: >> { %v878_v35 = vld [vmem:[%s1454_s23] sm:$0xff]  ;;  %s880_s28 = sadd.s32 1, %s1458_s24  ;;  %s872_s26 = sadd.s32 1, %s1462_s26   ;;  %s1462_s26 = sphi %s1460_s26, %s872_s26   ;;  %s1458_s24 = sphi %s1456_s24, %s1457_s24   ;;  %s1454_s23 = sphi %s1452_s23, %s885_s23   ;;  %s1450_s22 = sphi %s1448_s22, %s886_s22  }
 0x18a   : >> { %879 = vst [vmem:[%s1450_s22] sm:$0xff] %v878_v35  ;;  %p881_p0 = scmp.ge.s32.totalorder %s880_s28, %s1375_s21  ;;  %p871_p1 = scmp.ge.s32.totalorder %s872_s26, %s1375_s21 }
 0x18c   : >> { %s1800_s28 = smov (%p881_p0, %s880_s28), 0  ;;  %874 = sbr.rel (!%p871_p1) target bundleno = 393 (0x189), region = 133 }
 0x18d   : >> { %s1049_s12 = sshll.u32 %s1800_s28, 3  ;;  %s1457_s24 = smov %s1800_s28  }
 0x18e   : >> { %s885_s23 = scalar_lea.vmem %s866_s17, %s1049_s12 [#allocation2]   ;;  %s886_s22 = scalar_lea.vmem %s868_s18, %s1049_s12  }
 0x193 PF: > { %p10_p2 = scmp.ge.s32.totalorder %s1501_s16, 4   ;;  %s1792_s12 = smov %s1426_s13 }
 0x194   : > { %s1793_s13 = smov %s1509_s19  ;;  %s1794_s14 = smov %s1501_s16 }
 0x195   :  { %12 = sbr.rel (!%p10_p2) target bundleno = 2 (0x2), region = 144 }

</bundles_post_ra>
